<compile_context>
chip_gen: v7x
topology: tpu7x:2x2x1
jax: 0.10.0
libtpu: 0.0.40
codegen_flags: <defaults>
</compile_context>

<pallas_src>
import functools
import math

import numpy as np

import jax
import jax.numpy as jnp
from jax.experimental import pallas as pl
from jax.experimental.pallas import tpu as pltpu


_WEIGHT_KEYS = ("wqkv", "bqkv", "wo", "bo", "ln1_g", "ln1_b",
                "w1", "b1", "w2", "b2", "ln2_g", "ln2_b")
_N_KERNEL_WEIGHTS = 16     # per-head-split weights handed to the kernel


# ---------------------------------------------------------------------------
# Helpers
# ---------------------------------------------------------------------------
def _const_index_map(ndim):
    """Index map that always returns block (0, ..., 0): fetched once, VMEM-resident."""
    def idx(*_):
        return (0,) * ndim
    return idx


def _pick_b_tile(n_seq, seq_len, target_m=256):
    """Largest divisor of n_seq whose row-block (t*seq_len) stays <= target_m and keeps
    the sublane dim either 8-aligned or equal to the full array (BlockSpec rule)."""
    best = None
    for t in range(1, n_seq + 1):
        if n_seq % t:
            continue
        m = t * seq_len
        if m <= target_m and (m % 8 == 0 or t == n_seq):
            best = t
    return best if best is not None else n_seq


def _block_attn_bias(m, seq_len):
    """Additive attention bias: 0 within a sequence, -1e30 across sequences."""
    blk = (np.arange(m)[:, None] // seq_len) == (np.arange(m)[None, :] // seq_len)
    return jnp.asarray(np.where(blk, 0.0, -1e30).astype(np.float32))


def _pool_matrix(m, seq_len):
    """(seq_len, m) selection matrix: pooled[s] = sum over rows r with r % seq_len == s."""
    sel = (np.arange(m)[None, :] % seq_len) == np.arange(seq_len)[:, None]
    return jnp.asarray(sel.astype(np.float32))


def _prepare_weights(params, n_heads):
    """Split the packed QKV / output-projection weights per head so the kernel only
    needs clean leading-dim ref indexing (no lane-offset slicing)."""
    wqkv = params["wqkv"]                                        # (L, D, 3D)
    L, D, _ = wqkv.shape
    hd = D // n_heads
    w = wqkv.reshape(L, D, 3, n_heads, hd).transpose(0, 2, 3, 1, 4)       # (L,3,H,D,hd)
    b = params["bqkv"].reshape(L, 1, 3, n_heads, hd).transpose(0, 2, 3, 1, 4)  # (L,3,H,1,hd)
    woh = params["wo"].reshape(L, n_heads, hd, D)                          # (L,H,hd,D)
    return (w[:, 0], w[:, 1], w[:, 2],          # wq, wk, wv   (L,H,D,hd)
            b[:, 0], b[:, 1], b[:, 2],          # bq, bk, bv   (L,H,1,hd)
            woh,                                # per-head output projection
            params["bo"], params["ln1_g"], params["ln1_b"],
            params["w1"], params["b1"], params["w2"], params["b2"],
            params["ln2_g"], params["ln2_b"])


def _cost_estimate(n_seq_total, seq_len, d, f, n_layers, n_heads, weights):
    m = n_seq_total * seq_len
    per_layer = (2 * m * d * 3 * d          # QKV projections
                 + 2 * 2 * m * m * (d // n_heads) * n_heads  # scores + PV (block-masked)
                 + 2 * m * d * d            # output projection
                 + 2 * m * d * f + 2 * m * f * d)            # FFN
    flops = n_layers * per_layer
    transcendentals = n_layers * n_heads * m * m
    weight_bytes = sum(int(w.size) * w.dtype.itemsize for w in weights)
    bytes_accessed = weight_bytes + 2 * m * d * 4
    return pl.CostEstimate(flops=int(flops), transcendentals=int(transcendentals),
                           bytes_accessed=int(bytes_accessed))


# ---------------------------------------------------------------------------
# Core: all encoder layers for one block of sequences (x2 is (M, D), M = b_tile*S,
# sequences laid out contiguously row-major).  Weights are resident refs.
# ---------------------------------------------------------------------------
def _apply_layers(x2, attn_bias, refs, *, n_layers, n_heads):
    (wq, wk, wv, bq, bk, bv, woh, bo, ln1g, ln1b,
     w1, b1, w2, b2, ln2g, ln2b) = refs
    M, D = x2.shape
    hd = D // n_heads
    scale = 1.0 / math.sqrt(hd)

    def layer_norm(z, g, b):                      # PyTorch LayerNorm, eps=1e-5
        mu = jnp.mean(z, axis=-1, keepdims=True)
        c = z - mu
        var = jnp.mean(c * c, axis=-1, keepdims=True)
        return c * jax.lax.rsqrt(var + 1e-5) * g + b

    for l in range(n_layers):                     # static unroll (n_layers is small)
        attn = jnp.zeros((M, D), jnp.float32) + bo[l]
        for h in range(n_heads):                  # static unroll over heads
            # Per-head projections from clean (D, hd) weight views, fused over M rows.
            q = jnp.dot(x2, wq[l, h], preferred_element_type=jnp.float32) + bq[l, h]
            k = jnp.dot(x2, wk[l, h], preferred_element_type=jnp.float32) + bk[l, h]
            v = jnp.dot(x2, wv[l, h], preferred_element_type=jnp.float32) + bv[l, h]
            # Block-diagonal-masked attention over the whole (M, M) block at once.
            s = jnp.dot(q, k.T, preferred_element_type=jnp.float32) * scale + attn_bias
            s = s - jnp.max(s, axis=-1, keepdims=True)
            p = jnp.exp(s)
            p = p / jnp.sum(p, axis=-1, keepdims=True)
            a = jnp.dot(p, v, preferred_element_type=jnp.float32)
            # Accumulate straight into the output projection (no assembly scratch).
            attn = attn + jnp.dot(a, woh[l, h], preferred_element_type=jnp.float32)
        y = layer_norm(x2 + attn, ln1g[l], ln1b[l])
        # Feed-forward (ReLU; dropout is identity in eval mode).
        h1 = jnp.maximum(jnp.dot(y, w1[l], preferred_element_type=jnp.float32) + b1[l], 0.0)
        h2 = jnp.dot(h1, w2[l], preferred_element_type=jnp.float32) + b2[l]
        x2 = layer_norm(y + h2, ln2g[l], ln2b[l])
    return x2


# ---------------------------------------------------------------------------
# Kernels
# ---------------------------------------------------------------------------
def _encoder_kernel(x_ref, bias_ref, *rest, n_layers, n_heads):
    """Full encoder output for one block of sequences."""
    w_refs = rest[:_N_KERNEL_WEIGHTS]
    o_ref = rest[_N_KERNEL_WEIGHTS]
    z = _apply_layers(x_ref[...].astype(jnp.float32), bias_ref[...], w_refs,
                      n_layers=n_layers, n_heads=n_heads)
    o_ref[...] = z.astype(o_ref.dtype)


def _encoder_pool_kernel(x_ref, bias_ref, pool_ref, *rest,
                         n_layers, n_heads, inv_count):
    """Encoder + fused mean-over-tokens + final Linear epilogue (recipe path)."""
    w_refs = rest[:_N_KERNEL_WEIGHTS]
    fcw_ref = rest[_N_KERNEL_WEIGHTS]
    fcb_ref = rest[_N_KERNEL_WEIGHTS + 1]
    o_ref = rest[_N_KERNEL_WEIGHTS + 2]
    acc_ref = rest[_N_KERNEL_WEIGHTS + 3]

    step = pl.program_id(0)
    z = _apply_layers(x_ref[...].astype(jnp.float32), bias_ref[...], w_refs,
                      n_layers=n_layers, n_heads=n_heads)
    # Partial sum over this block's encoder-batch elements: pooled[s] = sum_b z[b*S + s].
    psum = jnp.dot(pool_ref[...], z, preferred_element_type=jnp.float32)

    @pl.when(step == 0)
    def _init():
        acc_ref[...] = jnp.zeros_like(acc_ref)

    acc_ref[...] = acc_ref[...] + psum

    @pl.when(step == pl.num_programs(0) - 1)
    def _finalize():
        pooled = acc_ref[...] * inv_count                          # mean over tokens
        o_ref[...] = (jnp.dot(pooled, fcw_ref[...], preferred_element_type=jnp.float32)
                      + fcb_ref[...]).astype(o_ref.dtype)


# ---------------------------------------------------------------------------
# recipe1m `Transformer.forward` (nn.TransformerEncoder), PyTorch (S, B, D) layout.
# ---------------------------------------------------------------------------
def transformer_forward(x_sbd, params, *, n_heads, first_token=False, ignore_mask=None):
    """params: per-layer weights stacked on a leading layer axis (see make_params)."""
    # TODO(synk): src_key_padding_mask (ignore_mask) is not implemented; only the
    #             default forward path (ignore_mask=None) is reproduced.
    assert ignore_mask is None
    S, B, D = x_sbd.shape
    L = params["wqkv"].shape[0]
    F = params["w1"].shape[-1]
    assert D % n_heads == 0, "d_model must be divisible by n_heads"

    weights = _prepare_weights(params, n_heads)
    b_tile = _pick_b_tile(B, S)
    m_tile = b_tile * S
    grid = (B // b_tile,)

    # (S, B, D) -> sequence-major 2-D (B*S, D): one cheap XLA transpose+reshape so the
    # kernel blocks are plain contiguous row slabs (no strided DMA, no in-kernel reshape).
    x2d = jnp.transpose(x_sbd, (1, 0, 2)).reshape(B * S, D)
    attn_bias = _block_attn_bias(m_tile, S)

    x_spec = pl.BlockSpec((m_tile, D), lambda b: (b, 0))
    bias_spec = pl.BlockSpec(attn_bias.shape, _const_index_map(2))
    w_specs = [pl.BlockSpec(w.shape, _const_index_map(w.ndim)) for w in weights]
    out_spec = pl.BlockSpec((m_tile, D), lambda b: (b, 0))

    kernel = functools.partial(_encoder_kernel, n_layers=L, n_heads=n_heads)
    out2d = pl.pallas_call(
        kernel,
        out_shape=jax.ShapeDtypeStruct((B * S, D), x_sbd.dtype),
        grid_spec=pltpu.PrefetchScalarGridSpec(
            num_scalar_prefetch=0,
            grid=grid,
            in_specs=[x_spec, bias_spec] + w_specs,
            out_specs=out_spec),
        compiler_params=pltpu.CompilerParams(dimension_semantics=("parallel",)),
        cost_estimate=_cost_estimate(B, S, D, F, L, n_heads, weights),
    )(x2d, attn_bias, *weights)

    out = jnp.transpose(out2d.reshape(B, S, D), (1, 0, 2))      # back to (S, B, D)
    if first_token:                                             # Transformer: x = x[:, 0]
        out = out[:, 0]
    return out


# ---------------------------------------------------------------------------
# Full PTransformerRecipeEmbedding forward (default config: no cls token,
# first_token=False, activations=None).  The mean-over-tokens + final nn.Linear are
# fused into the kernel epilogue; only the pooled (batch, dim_emb) result hits HBM.
# ---------------------------------------------------------------------------
def recipe_embedding_forward(tokens, embed_table, enc_params, fc_w, fc_b, *, n_heads):
    """tokens: (batch, T) ids of torch.cat((title, ingrs, instrs), -1)[:, :limit]."""
    # TODO(synk): embedding gather stays as plain jnp.take; an in-kernel gather would
    #             need scalar-prefetched token ids + a pl.Element row index_map.
    emb = jnp.take(embed_table, tokens, axis=0)                 # (batch, T, D)
    batch, T, D = emb.shape
    L = enc_params["wqkv"].shape[0]
    F = enc_params["w1"].shape[-1]
    E = fc_w.shape[-1]

    weights = _prepare_weights(enc_params, n_heads)
    # nn.TransformerEncoderLayer defaults to batch_first=False, so the PyTorch module
    # feeds (batch, T, D) and the encoder treats dim 0 as "sequence" and dim 1 as
    # "batch".  Reproduce that literally: group rows per encoder-batch element (token
    # position t): row (t*batch + s) = emb[s, t, :].
    x2d = jnp.transpose(emb, (1, 0, 2)).reshape(T * batch, D)
    b_tile = _pick_b_tile(T, batch)
    m_tile = b_tile * batch
    grid = (T // b_tile,)

    attn_bias = _block_attn_bias(m_tile, batch)
    pool_mat = _pool_matrix(m_tile, batch)
    fcb2 = fc_b.reshape(1, E)

    x_spec = pl.BlockSpec((m_tile, D), lambda b: (b, 0))
    bias_spec = pl.BlockSpec(attn_bias.shape, _const_index_map(2))
    pool_spec = pl.BlockSpec(pool_mat.shape, _const_index_map(2))
    w_specs = [pl.BlockSpec(w.shape, _const_index_map(w.ndim)) for w in weights]
    fc_specs = [pl.BlockSpec(fc_w.shape, _const_index_map(2)),
                pl.BlockSpec((1, E), _const_index_map(2))]
    out_spec = pl.BlockSpec((batch, E), _const_index_map(2))

    kernel = functools.partial(_encoder_pool_kernel, n_layers=L, n_heads=n_heads,
                               inv_count=1.0 / T)
    out = pl.pallas_call(
        kernel,
        out_shape=jax.ShapeDtypeStruct((batch, E), jnp.float32),
        grid_spec=pltpu.PrefetchScalarGridSpec(
            num_scalar_prefetch=0,
            grid=grid,
            in_specs=[x_spec, bias_spec, pool_spec] + w_specs + fc_specs,
            out_specs=out_spec,
            scratch_shapes=[pltpu.VMEM((batch, D), jnp.float32)]),
        # Layer-carry-free, but the pooled output accumulates across grid steps ->
        # the grid axis must stay "arbitrary".
        compiler_params=pltpu.CompilerParams(dimension_semantics=("arbitrary",)),
        cost_estimate=_cost_estimate(T, batch, D, F, L, n_heads, weights),
    )(x2d, attn_bias, pool_mat, *weights, fc_w, fcb2)
    # TODO(synk): opt['activations'] (arbitrary nn.functional by name) not implemented.
    return out


# ---------------------------------------------------------------------------
# Pure-JAX reference (mirrors eval-mode PyTorch TransformerEncoderLayer math).
# ---------------------------------------------------------------------------
def _reference_forward(x_sbd, params, *, n_heads):
    x = jnp.transpose(x_sbd, (1, 0, 2)).astype(jnp.float32)
    B, S, D = x.shape
    hd = D // n_heads
    L = params["wqkv"].shape[0]

    def ln(z, g, b):
        mu = jnp.mean(z, -1, keepdims=True)
        var = jnp.mean((z - mu) ** 2, -1, keepdims=True)
        return (z - mu) / jnp.sqrt(var + 1e-5) * g + b

    for l in range(L):
        qkv = x @ params["wqkv"][l] + params["bqkv"][l]
        q, k, v = qkv[..., :D], qkv[..., D:2 * D], qkv[..., 2 * D:]
        qh = q.reshape(B, S, n_heads, hd).transpose(0, 2, 1, 3)
        kh = k.reshape(B, S, n_heads, hd).transpose(0, 2, 1, 3)
        vh = v.reshape(B, S, n_heads, hd).transpose(0, 2, 1, 3)
        s = jnp.einsum("bhqd,bhkd->bhqk", qh, kh) / math.sqrt(hd)
        p = jax.nn.softmax(s, axis=-1)
        a = jnp.einsum("bhqk,bhkd->bhqd", p, vh).transpose(0, 2, 1, 3).reshape(B, S, D)
        a = a @ params["wo"][l] + params["bo"][l]
        y = ln(x + a, params["ln1_g"][l], params["ln1_b"][l])
        h = jnp.maximum(y @ params["w1"][l] + params["b1"][l], 0.0)
        h = h @ params["w2"][l] + params["b2"][l]
        x = ln(y + h, params["ln2_g"][l], params["ln2_b"][l])
    return jnp.transpose(x, (1, 0, 2))


# ---------------------------------------------------------------------------
# Deterministic parameters (nn.TransformerEncoderLayer shapes, stacked over layers;
# weights pre-transposed so the math is x @ W).
# ---------------------------------------------------------------------------
def make_params(key, n_layers, d_model, dim_feedforward):
    sd = 1.0 / math.sqrt(d_model)
    sf = 1.0 / math.sqrt(dim_feedforward)
    keys = jax.random.split(key, 6 * n_layers)

    def uni(k, shape, bound):
        return jax.random.uniform(k, shape, jnp.float32, -bound, bound)

    acc = {k: [] for k in _WEIGHT_KEYS}
    for i in range(n_layers):
        k = [keys[6 * i + j] for j in range(6)]
        acc["wqkv"].append(uni(k[0], (d_model, 3 * d_model), sd))
        acc["bqkv"].append(uni(k[1], (1, 3 * d_model), sd))
        acc["wo"].append(uni(k[2], (d_model, d_model), sd))
        acc["bo"].append(jnp.zeros((1, d_model), jnp.float32))
        acc["ln1_g"].append(jnp.ones((1, d_model), jnp.float32))
        acc["ln1_b"].append(jnp.zeros((1, d_model), jnp.float32))
        acc["w1"].append(uni(k[3], (d_model, dim_feedforward), sd))
        acc["b1"].append(uni(k[4], (1, dim_feedforward), sd))
        acc["w2"].append(uni(k[5], (dim_feedforward, d_model), sf))
        acc["b2"].append(jnp.zeros((1, d_model), jnp.float32))
        acc["ln2_g"].append(jnp.ones((1, d_model), jnp.float32))
        acc["ln2_b"].append(jnp.zeros((1, d_model), jnp.float32))
    return {k: jnp.stack(v, axis=0) for k, v in acc.items()}


if __name__ == "__main__":
    # Small shapes consistent with the module: d_model=32, n_heads=2, n_layers=2,
    # dim_feedforward=64 (scaled-down), seq=8, batch=2.
    S, B, D, H, L, F = 8, 2, 32, 2, 2, 64
    key = jax.random.PRNGKey(0)
    kx, kp, kt, ke, kf = jax.random.split(key, 5)

    # --- Transformer sub-module (PyTorch seq-first (S, B, D) layout) -------------
    x = jax.random.normal(kx, (S, B, D), jnp.float32)
    params = make_params(kp, L, D, F)
    out = jax.block_until_ready(transformer_forward(x, params, n_heads=H))
    ref = _reference_forward(x, params, n_heads=H)
    assert out.shape == (S, B, D)
    assert jnp.allclose(out, ref, atol=1e-3, rtol=1e-3), "encoder mismatch vs reference"

    # --- full PTransformerRecipeEmbedding forward (embed -> encoder -> mean -> fc) -
    VOCAB, T, DIM_EMB = 50, 8, 16
    tokens = jax.random.randint(kt, (B, T), 0, VOCAB)
    table = jax.random.normal(ke, (VOCAB, D), jnp.float32) * 0.02
    kf1, kf2 = jax.random.split(kf)
    fc_w = jax.random.normal(kf1, (D, DIM_EMB), jnp.float32) * 0.05
    fc_b = jax.random.normal(kf2, (DIM_EMB,), jnp.float32) * 0.05
    enc_params = make_params(jax.random.PRNGKey(1), L, D, F)

    y = jax.block_until_ready(
        recipe_embedding_forward(tokens, table, enc_params, fc_w, fc_b, n_heads=H))
    emb = jnp.take(table, tokens, axis=0)
    y_ref = jnp.mean(_reference_forward(emb, enc_params, n_heads=H), axis=1) @ fc_w + fc_b
    assert y.shape == (B, DIM_EMB)
    assert jnp.allclose(y, y_ref, atol=1e-3, rtol=1e-3), "recipe embedding mismatch"

    print("KERNEL_OK")
</pallas_src>

<mosaic_0001>
module attributes {stable_mosaic.version = 11 : i64} {
  func.func @_encoder_kernel(%arg0: i32, %arg1: memref<16x32xf32, #tpu.memory_space<vmem>>, %arg2: memref<16x16xf32, #tpu.memory_space<vmem>>, %arg3: memref<2x2x32x16xf32, #tpu.memory_space<vmem>>, %arg4: memref<2x2x32x16xf32, #tpu.memory_space<vmem>>, %arg5: memref<2x2x32x16xf32, #tpu.memory_space<vmem>>, %arg6: memref<2x2x1x16xf32, #tpu.memory_space<vmem>>, %arg7: memref<2x2x1x16xf32, #tpu.memory_space<vmem>>, %arg8: memref<2x2x1x16xf32, #tpu.memory_space<vmem>>, %arg9: memref<2x2x16x32xf32, #tpu.memory_space<vmem>>, %arg10: memref<2x1x32xf32, #tpu.memory_space<vmem>>, %arg11: memref<2x1x32xf32, #tpu.memory_space<vmem>>, %arg12: memref<2x1x32xf32, #tpu.memory_space<vmem>>, %arg13: memref<2x32x64xf32, #tpu.memory_space<vmem>>, %arg14: memref<2x1x64xf32, #tpu.memory_space<vmem>>, %arg15: memref<2x64x32xf32, #tpu.memory_space<vmem>>, %arg16: memref<2x1x32xf32, #tpu.memory_space<vmem>>, %arg17: memref<2x1x32xf32, #tpu.memory_space<vmem>>, %arg18: memref<2x1x32xf32, #tpu.memory_space<vmem>>, %arg19: memref<16x32xf32, #tpu.memory_space<vmem>>) attributes {dimension_semantics = [#tpu.dimension_semantics<parallel>], iteration_bounds = array<i64: 1>, scalar_prefetch = 0 : i64, scratch_operands = 0 : i64, tpu.core_type = #tpu.core_type<tc>, window_params = [{transform_indices = @transform_0, window_bounds = array<i64: 16, 32>}, {pipeline_mode = #tpu.pipeline_mode<synchronous>, transform_indices = @transform_1, window_bounds = array<i64: 16, 16>}, {pipeline_mode = #tpu.pipeline_mode<synchronous>, transform_indices = @transform_2, window_bounds = array<i64: 2, 2, 32, 16>}, {pipeline_mode = #tpu.pipeline_mode<synchronous>, transform_indices = @transform_3, window_bounds = array<i64: 2, 2, 32, 16>}, {pipeline_mode = #tpu.pipeline_mode<synchronous>, transform_indices = @transform_4, window_bounds = array<i64: 2, 2, 32, 16>}, {pipeline_mode = #tpu.pipeline_mode<synchronous>, transform_indices = @transform_5, window_bounds = array<i64: 2, 2, 1, 16>}, {pipeline_mode = #tpu.pipeline_mode<synchronous>, transform_indices = @transform_6, window_bounds = array<i64: 2, 2, 1, 16>}, {pipeline_mode = #tpu.pipeline_mode<synchronous>, transform_indices = @transform_7, window_bounds = array<i64: 2, 2, 1, 16>}, {pipeline_mode = #tpu.pipeline_mode<synchronous>, transform_indices = @transform_8, window_bounds = array<i64: 2, 2, 16, 32>}, {pipeline_mode = #tpu.pipeline_mode<synchronous>, transform_indices = @transform_9, window_bounds = array<i64: 2, 1, 32>}, {pipeline_mode = #tpu.pipeline_mode<synchronous>, transform_indices = @transform_10, window_bounds = array<i64: 2, 1, 32>}, {pipeline_mode = #tpu.pipeline_mode<synchronous>, transform_indices = @transform_11, window_bounds = array<i64: 2, 1, 32>}, {pipeline_mode = #tpu.pipeline_mode<synchronous>, transform_indices = @transform_12, window_bounds = array<i64: 2, 32, 64>}, {pipeline_mode = #tpu.pipeline_mode<synchronous>, transform_indices = @transform_13, window_bounds = array<i64: 2, 1, 64>}, {pipeline_mode = #tpu.pipeline_mode<synchronous>, transform_indices = @transform_14, window_bounds = array<i64: 2, 64, 32>}, {pipeline_mode = #tpu.pipeline_mode<synchronous>, transform_indices = @transform_15, window_bounds = array<i64: 2, 1, 32>}, {pipeline_mode = #tpu.pipeline_mode<synchronous>, transform_indices = @transform_16, window_bounds = array<i64: 2, 1, 32>}, {pipeline_mode = #tpu.pipeline_mode<synchronous>, transform_indices = @transform_17, window_bounds = array<i64: 2, 1, 32>}, {transform_indices = @transform_18, window_bounds = array<i64: 16, 32>}]} {
    %c0 = arith.constant 0 : index
    %c0_0 = arith.constant 0 : index
    %0 = vector.load %arg1[%c0, %c0_0] : memref<16x32xf32, #tpu.memory_space<vmem>>, vector<16x32xf32>
    %c0_1 = arith.constant 0 : index
    %c0_2 = arith.constant 0 : index
    %1 = vector.load %arg2[%c0_1, %c0_2] : memref<16x16xf32, #tpu.memory_space<vmem>>, vector<16x16xf32>
    %cst = arith.constant 0.000000e+00 : f32
    %2 = vector.broadcast %cst : f32 to vector<16x32xf32>
    %c0_3 = arith.constant 0 : index
    %c0_4 = arith.constant 0 : index
    %c0_5 = arith.constant 0 : index
    %3 = vector.load %arg10[%c0_3, %c0_4, %c0_5] : memref<2x1x32xf32, #tpu.memory_space<vmem>>, vector<1x1x32xf32>
    %4 = vector.shape_cast %3 : vector<1x1x32xf32> to vector<1x32xf32>
    %5 = vector.broadcast %4 : vector<1x32xf32> to vector<16x32xf32>
    %6 = arith.addf %2, %5 : vector<16x32xf32>
    %c0_6 = arith.constant 0 : index
    %c0_7 = arith.constant 0 : index
    %c0_8 = arith.constant 0 : index
    %c0_9 = arith.constant 0 : index
    %7 = vector.load %arg3[%c0_6, %c0_7, %c0_8, %c0_9] : memref<2x2x32x16xf32, #tpu.memory_space<vmem>>, vector<1x1x32x16xf32>
    %8 = vector.shape_cast %7 : vector<1x1x32x16xf32> to vector<32x16xf32>
    %cst_10 = arith.constant dense<0.000000e+00> : vector<16x16xf32>
    %9 = tpu.matmul %0, %8, %cst_10 {dimension_numbers = #tpu.dot_dimension_numbers<[1], [0], [0], [1], [0, 0, 1, 1], [], []>} : vector<16x32xf32>, vector<32x16xf32>, vector<16x16xf32> -> vector<16x16xf32>
    %c0_11 = arith.constant 0 : index
    %c0_12 = arith.constant 0 : index
    %c0_13 = arith.constant 0 : index
    %c0_14 = arith.constant 0 : index
    %10 = vector.load %arg6[%c0_11, %c0_12, %c0_13, %c0_14] : memref<2x2x1x16xf32, #tpu.memory_space<vmem>>, vector<1x1x1x16xf32>
    %11 = vector.shape_cast %10 : vector<1x1x1x16xf32> to vector<1x16xf32>
    %12 = vector.broadcast %11 : vector<1x16xf32> to vector<16x16xf32>
    %13 = arith.addf %9, %12 : vector<16x16xf32>
    %c0_15 = arith.constant 0 : index
    %c0_16 = arith.constant 0 : index
    %c0_17 = arith.constant 0 : index
    %c0_18 = arith.constant 0 : index
    %14 = vector.load %arg4[%c0_15, %c0_16, %c0_17, %c0_18] : memref<2x2x32x16xf32, #tpu.memory_space<vmem>>, vector<1x1x32x16xf32>
    %15 = vector.shape_cast %14 : vector<1x1x32x16xf32> to vector<32x16xf32>
    %cst_19 = arith.constant dense<0.000000e+00> : vector<16x16xf32>
    %16 = tpu.matmul %0, %15, %cst_19 {dimension_numbers = #tpu.dot_dimension_numbers<[1], [0], [0], [1], [0, 0, 1, 1], [], []>} : vector<16x32xf32>, vector<32x16xf32>, vector<16x16xf32> -> vector<16x16xf32>
    %c0_20 = arith.constant 0 : index
    %c0_21 = arith.constant 0 : index
    %c0_22 = arith.constant 0 : index
    %c0_23 = arith.constant 0 : index
    %17 = vector.load %arg7[%c0_20, %c0_21, %c0_22, %c0_23] : memref<2x2x1x16xf32, #tpu.memory_space<vmem>>, vector<1x1x1x16xf32>
    %18 = vector.shape_cast %17 : vector<1x1x1x16xf32> to vector<1x16xf32>
    %19 = vector.broadcast %18 : vector<1x16xf32> to vector<16x16xf32>
    %20 = arith.addf %16, %19 : vector<16x16xf32>
    %c0_24 = arith.constant 0 : index
    %c0_25 = arith.constant 0 : index
    %c0_26 = arith.constant 0 : index
    %c0_27 = arith.constant 0 : index
    %21 = vector.load %arg5[%c0_24, %c0_25, %c0_26, %c0_27] : memref<2x2x32x16xf32, #tpu.memory_space<vmem>>, vector<1x1x32x16xf32>
    %22 = vector.shape_cast %21 : vector<1x1x32x16xf32> to vector<32x16xf32>
    %cst_28 = arith.constant dense<0.000000e+00> : vector<16x16xf32>
    %23 = tpu.matmul %0, %22, %cst_28 {dimension_numbers = #tpu.dot_dimension_numbers<[1], [0], [0], [1], [0, 0, 1, 1], [], []>} : vector<16x32xf32>, vector<32x16xf32>, vector<16x16xf32> -> vector<16x16xf32>
    %c0_29 = arith.constant 0 : index
    %c0_30 = arith.constant 0 : index
    %c0_31 = arith.constant 0 : index
    %c0_32 = arith.constant 0 : index
    %24 = vector.load %arg8[%c0_29, %c0_30, %c0_31, %c0_32] : memref<2x2x1x16xf32, #tpu.memory_space<vmem>>, vector<1x1x1x16xf32>
    %25 = vector.shape_cast %24 : vector<1x1x1x16xf32> to vector<1x16xf32>
    %26 = vector.broadcast %25 : vector<1x16xf32> to vector<16x16xf32>
    %27 = arith.addf %23, %26 : vector<16x16xf32>
    %28 = tpu.transpose %20, [1, 0] : vector<16x16xf32> -> vector<16x16xf32>
    %cst_33 = arith.constant dense<0.000000e+00> : vector<16x16xf32>
    %29 = tpu.matmul %13, %28, %cst_33 {dimension_numbers = #tpu.dot_dimension_numbers<[1], [0], [0], [1], [0, 0, 1, 1], [], []>} : vector<16x16xf32>, vector<16x16xf32>, vector<16x16xf32> -> vector<16x16xf32>
    %cst_34 = arith.constant 2.500000e-01 : f32
    %30 = vector.broadcast %cst_34 : f32 to vector<16x16xf32>
    %31 = arith.mulf %29, %30 : vector<16x16xf32>
    %32 = arith.addf %31, %1 : vector<16x16xf32>
    %cst_35 = arith.constant dense<0xFF800000> : vector<16xf32>
    %33 = vector.multi_reduction <maximumf>, %32, %cst_35 [1] : vector<16x16xf32> to vector<16xf32>
    %34 = vector.shape_cast %33 : vector<16xf32> to vector<16x1xf32>
    %35 = vector.broadcast %34 : vector<16x1xf32> to vector<16x16xf32>
    %36 = arith.subf %32, %35 : vector<16x16xf32>
    %37 = math.exp %36 : vector<16x16xf32>
    %cst_36 = arith.constant dense<0.000000e+00> : vector<16xf32>
    %38 = vector.multi_reduction <add>, %37, %cst_36 [1] : vector<16x16xf32> to vector<16xf32>
    %39 = vector.shape_cast %38 : vector<16xf32> to vector<16x1xf32>
    %40 = vector.broadcast %39 : vector<16x1xf32> to vector<16x16xf32>
    %41 = arith.divf %37, %40 : vector<16x16xf32>
    %cst_37 = arith.constant dense<0.000000e+00> : vector<16x16xf32>
    %42 = tpu.matmul %41, %27, %cst_37 {dimension_numbers = #tpu.dot_dimension_numbers<[1], [0], [0], [1], [0, 0, 1, 1], [], []>} : vector<16x16xf32>, vector<16x16xf32>, vector<16x16xf32> -> vector<16x16xf32>
    %c0_38 = arith.constant 0 : index
    %c0_39 = arith.constant 0 : index
    %c0_40 = arith.constant 0 : index
    %c0_41 = arith.constant 0 : index
    %43 = vector.load %arg9[%c0_38, %c0_39, %c0_40, %c0_41] : memref<2x2x16x32xf32, #tpu.memory_space<vmem>>, vector<1x1x16x32xf32>
    %44 = vector.shape_cast %43 : vector<1x1x16x32xf32> to vector<16x32xf32>
    %cst_42 = arith.constant dense<0.000000e+00> : vector<16x32xf32>
    %45 = tpu.matmul %42, %44, %cst_42 {dimension_numbers = #tpu.dot_dimension_numbers<[1], [0], [0], [1], [0, 0, 1, 1], [], []>} : vector<16x16xf32>, vector<16x32xf32>, vector<16x32xf32> -> vector<16x32xf32>
    %46 = arith.addf %6, %45 : vector<16x32xf32>
    %c0_43 = arith.constant 0 : index
    %c1 = arith.constant 1 : index
    %c0_44 = arith.constant 0 : index
    %c0_45 = arith.constant 0 : index
    %47 = vector.load %arg3[%c0_43, %c1, %c0_44, %c0_45] : memref<2x2x32x16xf32, #tpu.memory_space<vmem>>, vector<1x1x32x16xf32>
    %48 = vector.shape_cast %47 : vector<1x1x32x16xf32> to vector<32x16xf32>
    %cst_46 = arith.constant dense<0.000000e+00> : vector<16x16xf32>
    %49 = tpu.matmul %0, %48, %cst_46 {dimension_numbers = #tpu.dot_dimension_numbers<[1], [0], [0], [1], [0, 0, 1, 1], [], []>} : vector<16x32xf32>, vector<32x16xf32>, vector<16x16xf32> -> vector<16x16xf32>
    %c0_47 = arith.constant 0 : index
    %c1_48 = arith.constant 1 : index
    %c0_49 = arith.constant 0 : index
    %c0_50 = arith.constant 0 : index
    %50 = vector.load %arg6[%c0_47, %c1_48, %c0_49, %c0_50] : memref<2x2x1x16xf32, #tpu.memory_space<vmem>>, vector<1x1x1x16xf32>
    %51 = vector.shape_cast %50 : vector<1x1x1x16xf32> to vector<1x16xf32>
    %52 = vector.broadcast %51 : vector<1x16xf32> to vector<16x16xf32>
    %53 = arith.addf %49, %52 : vector<16x16xf32>
    %c0_51 = arith.constant 0 : index
    %c1_52 = arith.constant 1 : index
    %c0_53 = arith.constant 0 : index
    %c0_54 = arith.constant 0 : index
    %54 = vector.load %arg4[%c0_51, %c1_52, %c0_53, %c0_54] : memref<2x2x32x16xf32, #tpu.memory_space<vmem>>, vector<1x1x32x16xf32>
    %55 = vector.shape_cast %54 : vector<1x1x32x16xf32> to vector<32x16xf32>
    %cst_55 = arith.constant dense<0.000000e+00> : vector<16x16xf32>
    %56 = tpu.matmul %0, %55, %cst_55 {dimension_numbers = #tpu.dot_dimension_numbers<[1], [0], [0], [1], [0, 0, 1, 1], [], []>} : vector<16x32xf32>, vector<32x16xf32>, vector<16x16xf32> -> vector<16x16xf32>
    %c0_56 = arith.constant 0 : index
    %c1_57 = arith.constant 1 : index
    %c0_58 = arith.constant 0 : index
    %c0_59 = arith.constant 0 : index
    %57 = vector.load %arg7[%c0_56, %c1_57, %c0_58, %c0_59] : memref<2x2x1x16xf32, #tpu.memory_space<vmem>>, vector<1x1x1x16xf32>
    %58 = vector.shape_cast %57 : vector<1x1x1x16xf32> to vector<1x16xf32>
    %59 = vector.broadcast %58 : vector<1x16xf32> to vector<16x16xf32>
    %60 = arith.addf %56, %59 : vector<16x16xf32>
    %c0_60 = arith.constant 0 : index
    %c1_61 = arith.constant 1 : index
    %c0_62 = arith.constant 0 : index
    %c0_63 = arith.constant 0 : index
    %61 = vector.load %arg5[%c0_60, %c1_61, %c0_62, %c0_63] : memref<2x2x32x16xf32, #tpu.memory_space<vmem>>, vector<1x1x32x16xf32>
    %62 = vector.shape_cast %61 : vector<1x1x32x16xf32> to vector<32x16xf32>
    %cst_64 = arith.constant dense<0.000000e+00> : vector<16x16xf32>
    %63 = tpu.matmul %0, %62, %cst_64 {dimension_numbers = #tpu.dot_dimension_numbers<[1], [0], [0], [1], [0, 0, 1, 1], [], []>} : vector<16x32xf32>, vector<32x16xf32>, vector<16x16xf32> -> vector<16x16xf32>
    %c0_65 = arith.constant 0 : index
    %c1_66 = arith.constant 1 : index
    %c0_67 = arith.constant 0 : index
    %c0_68 = arith.constant 0 : index
    %64 = vector.load %arg8[%c0_65, %c1_66, %c0_67, %c0_68] : memref<2x2x1x16xf32, #tpu.memory_space<vmem>>, vector<1x1x1x16xf32>
    %65 = vector.shape_cast %64 : vector<1x1x1x16xf32> to vector<1x16xf32>
    %66 = vector.broadcast %65 : vector<1x16xf32> to vector<16x16xf32>
    %67 = arith.addf %63, %66 : vector<16x16xf32>
    %68 = tpu.transpose %60, [1, 0] : vector<16x16xf32> -> vector<16x16xf32>
    %cst_69 = arith.constant dense<0.000000e+00> : vector<16x16xf32>
    %69 = tpu.matmul %53, %68, %cst_69 {dimension_numbers = #tpu.dot_dimension_numbers<[1], [0], [0], [1], [0, 0, 1, 1], [], []>} : vector<16x16xf32>, vector<16x16xf32>, vector<16x16xf32> -> vector<16x16xf32>
    %cst_70 = arith.constant 2.500000e-01 : f32
    %70 = vector.broadcast %cst_70 : f32 to vector<16x16xf32>
    %71 = arith.mulf %69, %70 : vector<16x16xf32>
    %72 = arith.addf %71, %1 : vector<16x16xf32>
    %cst_71 = arith.constant dense<0xFF800000> : vector<16xf32>
    %73 = vector.multi_reduction <maximumf>, %72, %cst_71 [1] : vector<16x16xf32> to vector<16xf32>
    %74 = vector.shape_cast %73 : vector<16xf32> to vector<16x1xf32>
    %75 = vector.broadcast %74 : vector<16x1xf32> to vector<16x16xf32>
    %76 = arith.subf %72, %75 : vector<16x16xf32>
    %77 = math.exp %76 : vector<16x16xf32>
    %cst_72 = arith.constant dense<0.000000e+00> : vector<16xf32>
    %78 = vector.multi_reduction <add>, %77, %cst_72 [1] : vector<16x16xf32> to vector<16xf32>
    %79 = vector.shape_cast %78 : vector<16xf32> to vector<16x1xf32>
    %80 = vector.broadcast %79 : vector<16x1xf32> to vector<16x16xf32>
    %81 = arith.divf %77, %80 : vector<16x16xf32>
    %cst_73 = arith.constant dense<0.000000e+00> : vector<16x16xf32>
    %82 = tpu.matmul %81, %67, %cst_73 {dimension_numbers = #tpu.dot_dimension_numbers<[1], [0], [0], [1], [0, 0, 1, 1], [], []>} : vector<16x16xf32>, vector<16x16xf32>, vector<16x16xf32> -> vector<16x16xf32>
    %c0_74 = arith.constant 0 : index
    %c1_75 = arith.constant 1 : index
    %c0_76 = arith.constant 0 : index
    %c0_77 = arith.constant 0 : index
    %83 = vector.load %arg9[%c0_74, %c1_75, %c0_76, %c0_77] : memref<2x2x16x32xf32, #tpu.memory_space<vmem>>, vector<1x1x16x32xf32>
    %84 = vector.shape_cast %83 : vector<1x1x16x32xf32> to vector<16x32xf32>
    %cst_78 = arith.constant dense<0.000000e+00> : vector<16x32xf32>
    %85 = tpu.matmul %82, %84, %cst_78 {dimension_numbers = #tpu.dot_dimension_numbers<[1], [0], [0], [1], [0, 0, 1, 1], [], []>} : vector<16x16xf32>, vector<16x32xf32>, vector<16x32xf32> -> vector<16x32xf32>
    %86 = arith.addf %46, %85 : vector<16x32xf32>
    %87 = arith.addf %0, %86 : vector<16x32xf32>
    %c0_79 = arith.constant 0 : index
    %c0_80 = arith.constant 0 : index
    %c0_81 = arith.constant 0 : index
    %88 = vector.load %arg11[%c0_79, %c0_80, %c0_81] : memref<2x1x32xf32, #tpu.memory_space<vmem>>, vector<1x1x32xf32>
    %89 = vector.shape_cast %88 : vector<1x1x32xf32> to vector<1x32xf32>
    %c0_82 = arith.constant 0 : index
    %c0_83 = arith.constant 0 : index
    %c0_84 = arith.constant 0 : index
    %90 = vector.load %arg12[%c0_82, %c0_83, %c0_84] : memref<2x1x32xf32, #tpu.memory_space<vmem>>, vector<1x1x32xf32>
    %91 = vector.shape_cast %90 : vector<1x1x32xf32> to vector<1x32xf32>
    %cst_85 = arith.constant dense<0.000000e+00> : vector<16xf32>
    %92 = vector.multi_reduction <add>, %87, %cst_85 [1] : vector<16x32xf32> to vector<16xf32>
    %93 = vector.shape_cast %92 : vector<16xf32> to vector<16x1xf32>
    %cst_86 = arith.constant 3.200000e+01 : f32
    %94 = vector.broadcast %cst_86 : f32 to vector<16x1xf32>
    %95 = arith.divf %93, %94 : vector<16x1xf32>
    %96 = vector.broadcast %95 : vector<16x1xf32> to vector<16x32xf32>
    %97 = arith.subf %87, %96 : vector<16x32xf32>
    %98 = arith.mulf %97, %97 : vector<16x32xf32>
    %cst_87 = arith.constant dense<0.000000e+00> : vector<16xf32>
    %99 = vector.multi_reduction <add>, %98, %cst_87 [1] : vector<16x32xf32> to vector<16xf32>
    %100 = vector.shape_cast %99 : vector<16xf32> to vector<16x1xf32>
    %cst_88 = arith.constant 3.200000e+01 : f32
    %101 = vector.broadcast %cst_88 : f32 to vector<16x1xf32>
    %102 = arith.divf %100, %101 : vector<16x1xf32>
    %cst_89 = arith.constant 9.99999974E-6 : f32
    %103 = vector.broadcast %cst_89 : f32 to vector<16x1xf32>
    %104 = arith.addf %102, %103 : vector<16x1xf32>
    %105 = math.rsqrt %104 : vector<16x1xf32>
    %106 = vector.broadcast %105 : vector<16x1xf32> to vector<16x32xf32>
    %107 = arith.mulf %97, %106 : vector<16x32xf32>
    %108 = vector.broadcast %89 : vector<1x32xf32> to vector<16x32xf32>
    %109 = arith.mulf %107, %108 : vector<16x32xf32>
    %110 = vector.broadcast %91 : vector<1x32xf32> to vector<16x32xf32>
    %111 = arith.addf %109, %110 : vector<16x32xf32>
    %c0_90 = arith.constant 0 : index
    %c0_91 = arith.constant 0 : index
    %c0_92 = arith.constant 0 : index
    %112 = vector.load %arg13[%c0_90, %c0_91, %c0_92] : memref<2x32x64xf32, #tpu.memory_space<vmem>>, vector<1x32x64xf32>
    %113 = vector.shape_cast %112 : vector<1x32x64xf32> to vector<32x64xf32>
    %cst_93 = arith.constant dense<0.000000e+00> : vector<16x64xf32>
    %114 = tpu.matmul %111, %113, %cst_93 {dimension_numbers = #tpu.dot_dimension_numbers<[1], [0], [0], [1], [0, 0, 1, 1], [], []>} : vector<16x32xf32>, vector<32x64xf32>, vector<16x64xf32> -> vector<16x64xf32>
    %c0_94 = arith.constant 0 : index
    %c0_95 = arith.constant 0 : index
    %c0_96 = arith.constant 0 : index
    %115 = vector.load %arg14[%c0_94, %c0_95, %c0_96] : memref<2x1x64xf32, #tpu.memory_space<vmem>>, vector<1x1x64xf32>
    %116 = vector.shape_cast %115 : vector<1x1x64xf32> to vector<1x64xf32>
    %117 = vector.broadcast %116 : vector<1x64xf32> to vector<16x64xf32>
    %118 = arith.addf %114, %117 : vector<16x64xf32>
    %cst_97 = arith.constant 0.000000e+00 : f32
    %119 = vector.broadcast %cst_97 : f32 to vector<16x64xf32>
    %120 = arith.maximumf %118, %119 : vector<16x64xf32>
    %c0_98 = arith.constant 0 : index
    %c0_99 = arith.constant 0 : index
    %c0_100 = arith.constant 0 : index
    %121 = vector.load %arg15[%c0_98, %c0_99, %c0_100] : memref<2x64x32xf32, #tpu.memory_space<vmem>>, vector<1x64x32xf32>
    %122 = vector.shape_cast %121 : vector<1x64x32xf32> to vector<64x32xf32>
    %cst_101 = arith.constant dense<0.000000e+00> : vector<16x32xf32>
    %123 = tpu.matmul %120, %122, %cst_101 {dimension_numbers = #tpu.dot_dimension_numbers<[1], [0], [0], [1], [0, 0, 1, 1], [], []>} : vector<16x64xf32>, vector<64x32xf32>, vector<16x32xf32> -> vector<16x32xf32>
    %c0_102 = arith.constant 0 : index
    %c0_103 = arith.constant 0 : index
    %c0_104 = arith.constant 0 : index
    %124 = vector.load %arg16[%c0_102, %c0_103, %c0_104] : memref<2x1x32xf32, #tpu.memory_space<vmem>>, vector<1x1x32xf32>
    %125 = vector.shape_cast %124 : vector<1x1x32xf32> to vector<1x32xf32>
    %126 = vector.broadcast %125 : vector<1x32xf32> to vector<16x32xf32>
    %127 = arith.addf %123, %126 : vector<16x32xf32>
    %128 = arith.addf %111, %127 : vector<16x32xf32>
    %c0_105 = arith.constant 0 : index
    %c0_106 = arith.constant 0 : index
    %c0_107 = arith.constant 0 : index
    %129 = vector.load %arg17[%c0_105, %c0_106, %c0_107] : memref<2x1x32xf32, #tpu.memory_space<vmem>>, vector<1x1x32xf32>
    %130 = vector.shape_cast %129 : vector<1x1x32xf32> to vector<1x32xf32>
    %c0_108 = arith.constant 0 : index
    %c0_109 = arith.constant 0 : index
    %c0_110 = arith.constant 0 : index
    %131 = vector.load %arg18[%c0_108, %c0_109, %c0_110] : memref<2x1x32xf32, #tpu.memory_space<vmem>>, vector<1x1x32xf32>
    %132 = vector.shape_cast %131 : vector<1x1x32xf32> to vector<1x32xf32>
    %cst_111 = arith.constant dense<0.000000e+00> : vector<16xf32>
    %133 = vector.multi_reduction <add>, %128, %cst_111 [1] : vector<16x32xf32> to vector<16xf32>
    %134 = vector.shape_cast %133 : vector<16xf32> to vector<16x1xf32>
    %cst_112 = arith.constant 3.200000e+01 : f32
    %135 = vector.broadcast %cst_112 : f32 to vector<16x1xf32>
    %136 = arith.divf %134, %135 : vector<16x1xf32>
    %137 = vector.broadcast %136 : vector<16x1xf32> to vector<16x32xf32>
    %138 = arith.subf %128, %137 : vector<16x32xf32>
    %139 = arith.mulf %138, %138 : vector<16x32xf32>
    %cst_113 = arith.constant dense<0.000000e+00> : vector<16xf32>
    %140 = vector.multi_reduction <add>, %139, %cst_113 [1] : vector<16x32xf32> to vector<16xf32>
    %141 = vector.shape_cast %140 : vector<16xf32> to vector<16x1xf32>
    %cst_114 = arith.constant 3.200000e+01 : f32
    %142 = vector.broadcast %cst_114 : f32 to vector<16x1xf32>
    %143 = arith.divf %141, %142 : vector<16x1xf32>
    %cst_115 = arith.constant 9.99999974E-6 : f32
    %144 = vector.broadcast %cst_115 : f32 to vector<16x1xf32>
    %145 = arith.addf %143, %144 : vector<16x1xf32>
    %146 = math.rsqrt %145 : vector<16x1xf32>
    %147 = vector.broadcast %146 : vector<16x1xf32> to vector<16x32xf32>
    %148 = arith.mulf %138, %147 : vector<16x32xf32>
    %149 = vector.broadcast %130 : vector<1x32xf32> to vector<16x32xf32>
    %150 = arith.mulf %148, %149 : vector<16x32xf32>
    %151 = vector.broadcast %132 : vector<1x32xf32> to vector<16x32xf32>
    %152 = arith.addf %150, %151 : vector<16x32xf32>
    %cst_116 = arith.constant 0.000000e+00 : f32
    %153 = vector.broadcast %cst_116 : f32 to vector<16x32xf32>
    %c1_117 = arith.constant 1 : index
    %c0_118 = arith.constant 0 : index
    %c0_119 = arith.constant 0 : index
    %154 = vector.load %arg10[%c1_117, %c0_118, %c0_119] : memref<2x1x32xf32, #tpu.memory_space<vmem>>, vector<1x1x32xf32>
    %155 = vector.shape_cast %154 : vector<1x1x32xf32> to vector<1x32xf32>
    %156 = vector.broadcast %155 : vector<1x32xf32> to vector<16x32xf32>
    %157 = arith.addf %153, %156 : vector<16x32xf32>
    %c1_120 = arith.constant 1 : index
    %c0_121 = arith.constant 0 : index
    %c0_122 = arith.constant 0 : index
    %c0_123 = arith.constant 0 : index
    %158 = vector.load %arg3[%c1_120, %c0_121, %c0_122, %c0_123] : memref<2x2x32x16xf32, #tpu.memory_space<vmem>>, vector<1x1x32x16xf32>
    %159 = vector.shape_cast %158 : vector<1x1x32x16xf32> to vector<32x16xf32>
    %cst_124 = arith.constant dense<0.000000e+00> : vector<16x16xf32>
    %160 = tpu.matmul %152, %159, %cst_124 {dimension_numbers = #tpu.dot_dimension_numbers<[1], [0], [0], [1], [0, 0, 1, 1], [], []>} : vector<16x32xf32>, vector<32x16xf32>, vector<16x16xf32> -> vector<16x16xf32>
    %c1_125 = arith.constant 1 : index
    %c0_126 = arith.constant 0 : index
    %c0_127 = arith.constant 0 : index
    %c0_128 = arith.constant 0 : index
    %161 = vector.load %arg6[%c1_125, %c0_126, %c0_127, %c0_128] : memref<2x2x1x16xf32, #tpu.memory_space<vmem>>, vector<1x1x1x16xf32>
    %162 = vector.shape_cast %161 : vector<1x1x1x16xf32> to vector<1x16xf32>
    %163 = vector.broadcast %162 : vector<1x16xf32> to vector<16x16xf32>
    %164 = arith.addf %160, %163 : vector<16x16xf32>
    %c1_129 = arith.constant 1 : index
    %c0_130 = arith.constant 0 : index
    %c0_131 = arith.constant 0 : index
    %c0_132 = arith.constant 0 : index
    %165 = vector.load %arg4[%c1_129, %c0_130, %c0_131, %c0_132] : memref<2x2x32x16xf32, #tpu.memory_space<vmem>>, vector<1x1x32x16xf32>
    %166 = vector.shape_cast %165 : vector<1x1x32x16xf32> to vector<32x16xf32>
    %cst_133 = arith.constant dense<0.000000e+00> : vector<16x16xf32>
    %167 = tpu.matmul %152, %166, %cst_133 {dimension_numbers = #tpu.dot_dimension_numbers<[1], [0], [0], [1], [0, 0, 1, 1], [], []>} : vector<16x32xf32>, vector<32x16xf32>, vector<16x16xf32> -> vector<16x16xf32>
    %c1_134 = arith.constant 1 : index
    %c0_135 = arith.constant 0 : index
    %c0_136 = arith.constant 0 : index
    %c0_137 = arith.constant 0 : index
    %168 = vector.load %arg7[%c1_134, %c0_135, %c0_136, %c0_137] : memref<2x2x1x16xf32, #tpu.memory_space<vmem>>, vector<1x1x1x16xf32>
    %169 = vector.shape_cast %168 : vector<1x1x1x16xf32> to vector<1x16xf32>
    %170 = vector.broadcast %169 : vector<1x16xf32> to vector<16x16xf32>
    %171 = arith.addf %167, %170 : vector<16x16xf32>
    %c1_138 = arith.constant 1 : index
    %c0_139 = arith.constant 0 : index
    %c0_140 = arith.constant 0 : index
    %c0_141 = arith.constant 0 : index
    %172 = vector.load %arg5[%c1_138, %c0_139, %c0_140, %c0_141] : memref<2x2x32x16xf32, #tpu.memory_space<vmem>>, vector<1x1x32x16xf32>
    %173 = vector.shape_cast %172 : vector<1x1x32x16xf32> to vector<32x16xf32>
    %cst_142 = arith.constant dense<0.000000e+00> : vector<16x16xf32>
    %174 = tpu.matmul %152, %173, %cst_142 {dimension_numbers = #tpu.dot_dimension_numbers<[1], [0], [0], [1], [0, 0, 1, 1], [], []>} : vector<16x32xf32>, vector<32x16xf32>, vector<16x16xf32> -> vector<16x16xf32>
    %c1_143 = arith.constant 1 : index
    %c0_144 = arith.constant 0 : index
    %c0_145 = arith.constant 0 : index
    %c0_146 = arith.constant 0 : index
    %175 = vector.load %arg8[%c1_143, %c0_144, %c0_145, %c0_146] : memref<2x2x1x16xf32, #tpu.memory_space<vmem>>, vector<1x1x1x16xf32>
    %176 = vector.shape_cast %175 : vector<1x1x1x16xf32> to vector<1x16xf32>
    %177 = vector.broadcast %176 : vector<1x16xf32> to vector<16x16xf32>
    %178 = arith.addf %174, %177 : vector<16x16xf32>
    %179 = tpu.transpose %171, [1, 0] : vector<16x16xf32> -> vector<16x16xf32>
    %cst_147 = arith.constant dense<0.000000e+00> : vector<16x16xf32>
    %180 = tpu.matmul %164, %179, %cst_147 {dimension_numbers = #tpu.dot_dimension_numbers<[1], [0], [0], [1], [0, 0, 1, 1], [], []>} : vector<16x16xf32>, vector<16x16xf32>, vector<16x16xf32> -> vector<16x16xf32>
    %cst_148 = arith.constant 2.500000e-01 : f32
    %181 = vector.broadcast %cst_148 : f32 to vector<16x16xf32>
    %182 = arith.mulf %180, %181 : vector<16x16xf32>
    %183 = arith.addf %182, %1 : vector<16x16xf32>
    %cst_149 = arith.constant dense<0xFF800000> : vector<16xf32>
    %184 = vector.multi_reduction <maximumf>, %183, %cst_149 [1] : vector<16x16xf32> to vector<16xf32>
    %185 = vector.shape_cast %184 : vector<16xf32> to vector<16x1xf32>
    %186 = vector.broadcast %185 : vector<16x1xf32> to vector<16x16xf32>
    %187 = arith.subf %183, %186 : vector<16x16xf32>
    %188 = math.exp %187 : vector<16x16xf32>
    %cst_150 = arith.constant dense<0.000000e+00> : vector<16xf32>
    %189 = vector.multi_reduction <add>, %188, %cst_150 [1] : vector<16x16xf32> to vector<16xf32>
    %190 = vector.shape_cast %189 : vector<16xf32> to vector<16x1xf32>
    %191 = vector.broadcast %190 : vector<16x1xf32> to vector<16x16xf32>
    %192 = arith.divf %188, %191 : vector<16x16xf32>
    %cst_151 = arith.constant dense<0.000000e+00> : vector<16x16xf32>
    %193 = tpu.matmul %192, %178, %cst_151 {dimension_numbers = #tpu.dot_dimension_numbers<[1], [0], [0], [1], [0, 0, 1, 1], [], []>} : vector<16x16xf32>, vector<16x16xf32>, vector<16x16xf32> -> vector<16x16xf32>
    %c1_152 = arith.constant 1 : index
    %c0_153 = arith.constant 0 : index
    %c0_154 = arith.constant 0 : index
    %c0_155 = arith.constant 0 : index
    %194 = vector.load %arg9[%c1_152, %c0_153, %c0_154, %c0_155] : memref<2x2x16x32xf32, #tpu.memory_space<vmem>>, vector<1x1x16x32xf32>
    %195 = vector.shape_cast %194 : vector<1x1x16x32xf32> to vector<16x32xf32>
    %cst_156 = arith.constant dense<0.000000e+00> : vector<16x32xf32>
    %196 = tpu.matmul %193, %195, %cst_156 {dimension_numbers = #tpu.dot_dimension_numbers<[1], [0], [0], [1], [0, 0, 1, 1], [], []>} : vector<16x16xf32>, vector<16x32xf32>, vector<16x32xf32> -> vector<16x32xf32>
    %197 = arith.addf %157, %196 : vector<16x32xf32>
    %c1_157 = arith.constant 1 : index
    %c1_158 = arith.constant 1 : index
    %c0_159 = arith.constant 0 : index
    %c0_160 = arith.constant 0 : index
    %198 = vector.load %arg3[%c1_157, %c1_158, %c0_159, %c0_160] : memref<2x2x32x16xf32, #tpu.memory_space<vmem>>, vector<1x1x32x16xf32>
    %199 = vector.shape_cast %198 : vector<1x1x32x16xf32> to vector<32x16xf32>
    %cst_161 = arith.constant dense<0.000000e+00> : vector<16x16xf32>
    %200 = tpu.matmul %152, %199, %cst_161 {dimension_numbers = #tpu.dot_dimension_numbers<[1], [0], [0], [1], [0, 0, 1, 1], [], []>} : vector<16x32xf32>, vector<32x16xf32>, vector<16x16xf32> -> vector<16x16xf32>
    %c1_162 = arith.constant 1 : index
    %c1_163 = arith.constant 1 : index
    %c0_164 = arith.constant 0 : index
    %c0_165 = arith.constant 0 : index
    %201 = vector.load %arg6[%c1_162, %c1_163, %c0_164, %c0_165] : memref<2x2x1x16xf32, #tpu.memory_space<vmem>>, vector<1x1x1x16xf32>
    %202 = vector.shape_cast %201 : vector<1x1x1x16xf32> to vector<1x16xf32>
    %203 = vector.broadcast %202 : vector<1x16xf32> to vector<16x16xf32>
    %204 = arith.addf %200, %203 : vector<16x16xf32>
    %c1_166 = arith.constant 1 : index
    %c1_167 = arith.constant 1 : index
    %c0_168 = arith.constant 0 : index
    %c0_169 = arith.constant 0 : index
    %205 = vector.load %arg4[%c1_166, %c1_167, %c0_168, %c0_169] : memref<2x2x32x16xf32, #tpu.memory_space<vmem>>, vector<1x1x32x16xf32>
    %206 = vector.shape_cast %205 : vector<1x1x32x16xf32> to vector<32x16xf32>
    %cst_170 = arith.constant dense<0.000000e+00> : vector<16x16xf32>
    %207 = tpu.matmul %152, %206, %cst_170 {dimension_numbers = #tpu.dot_dimension_numbers<[1], [0], [0], [1], [0, 0, 1, 1], [], []>} : vector<16x32xf32>, vector<32x16xf32>, vector<16x16xf32> -> vector<16x16xf32>
    %c1_171 = arith.constant 1 : index
    %c1_172 = arith.constant 1 : index
    %c0_173 = arith.constant 0 : index
    %c0_174 = arith.constant 0 : index
    %208 = vector.load %arg7[%c1_171, %c1_172, %c0_173, %c0_174] : memref<2x2x1x16xf32, #tpu.memory_space<vmem>>, vector<1x1x1x16xf32>
    %209 = vector.shape_cast %208 : vector<1x1x1x16xf32> to vector<1x16xf32>
    %210 = vector.broadcast %209 : vector<1x16xf32> to vector<16x16xf32>
    %211 = arith.addf %207, %210 : vector<16x16xf32>
    %c1_175 = arith.constant 1 : index
    %c1_176 = arith.constant 1 : index
    %c0_177 = arith.constant 0 : index
    %c0_178 = arith.constant 0 : index
    %212 = vector.load %arg5[%c1_175, %c1_176, %c0_177, %c0_178] : memref<2x2x32x16xf32, #tpu.memory_space<vmem>>, vector<1x1x32x16xf32>
    %213 = vector.shape_cast %212 : vector<1x1x32x16xf32> to vector<32x16xf32>
    %cst_179 = arith.constant dense<0.000000e+00> : vector<16x16xf32>
    %214 = tpu.matmul %152, %213, %cst_179 {dimension_numbers = #tpu.dot_dimension_numbers<[1], [0], [0], [1], [0, 0, 1, 1], [], []>} : vector<16x32xf32>, vector<32x16xf32>, vector<16x16xf32> -> vector<16x16xf32>
    %c1_180 = arith.constant 1 : index
    %c1_181 = arith.constant 1 : index
    %c0_182 = arith.constant 0 : index
    %c0_183 = arith.constant 0 : index
    %215 = vector.load %arg8[%c1_180, %c1_181, %c0_182, %c0_183] : memref<2x2x1x16xf32, #tpu.memory_space<vmem>>, vector<1x1x1x16xf32>
    %216 = vector.shape_cast %215 : vector<1x1x1x16xf32> to vector<1x16xf32>
    %217 = vector.broadcast %216 : vector<1x16xf32> to vector<16x16xf32>
    %218 = arith.addf %214, %217 : vector<16x16xf32>
    %219 = tpu.transpose %211, [1, 0] : vector<16x16xf32> -> vector<16x16xf32>
    %cst_184 = arith.constant dense<0.000000e+00> : vector<16x16xf32>
    %220 = tpu.matmul %204, %219, %cst_184 {dimension_numbers = #tpu.dot_dimension_numbers<[1], [0], [0], [1], [0, 0, 1, 1], [], []>} : vector<16x16xf32>, vector<16x16xf32>, vector<16x16xf32> -> vector<16x16xf32>
    %cst_185 = arith.constant 2.500000e-01 : f32
    %221 = vector.broadcast %cst_185 : f32 to vector<16x16xf32>
    %222 = arith.mulf %220, %221 : vector<16x16xf32>
    %223 = arith.addf %222, %1 : vector<16x16xf32>
    %cst_186 = arith.constant dense<0xFF800000> : vector<16xf32>
    %224 = vector.multi_reduction <maximumf>, %223, %cst_186 [1] : vector<16x16xf32> to vector<16xf32>
    %225 = vector.shape_cast %224 : vector<16xf32> to vector<16x1xf32>
    %226 = vector.broadcast %225 : vector<16x1xf32> to vector<16x16xf32>
    %227 = arith.subf %223, %226 : vector<16x16xf32>
    %228 = math.exp %227 : vector<16x16xf32>
    %cst_187 = arith.constant dense<0.000000e+00> : vector<16xf32>
    %229 = vector.multi_reduction <add>, %228, %cst_187 [1] : vector<16x16xf32> to vector<16xf32>
    %230 = vector.shape_cast %229 : vector<16xf32> to vector<16x1xf32>
    %231 = vector.broadcast %230 : vector<16x1xf32> to vector<16x16xf32>
    %232 = arith.divf %228, %231 : vector<16x16xf32>
    %cst_188 = arith.constant dense<0.000000e+00> : vector<16x16xf32>
    %233 = tpu.matmul %232, %218, %cst_188 {dimension_numbers = #tpu.dot_dimension_numbers<[1], [0], [0], [1], [0, 0, 1, 1], [], []>} : vector<16x16xf32>, vector<16x16xf32>, vector<16x16xf32> -> vector<16x16xf32>
    %c1_189 = arith.constant 1 : index
    %c1_190 = arith.constant 1 : index
    %c0_191 = arith.constant 0 : index
    %c0_192 = arith.constant 0 : index
    %234 = vector.load %arg9[%c1_189, %c1_190, %c0_191, %c0_192] : memref<2x2x16x32xf32, #tpu.memory_space<vmem>>, vector<1x1x16x32xf32>
    %235 = vector.shape_cast %234 : vector<1x1x16x32xf32> to vector<16x32xf32>
    %cst_193 = arith.constant dense<0.000000e+00> : vector<16x32xf32>
    %236 = tpu.matmul %233, %235, %cst_193 {dimension_numbers = #tpu.dot_dimension_numbers<[1], [0], [0], [1], [0, 0, 1, 1], [], []>} : vector<16x16xf32>, vector<16x32xf32>, vector<16x32xf32> -> vector<16x32xf32>
    %237 = arith.addf %197, %236 : vector<16x32xf32>
    %238 = arith.addf %152, %237 : vector<16x32xf32>
    %c1_194 = arith.constant 1 : index
    %c0_195 = arith.constant 0 : index
    %c0_196 = arith.constant 0 : index
    %239 = vector.load %arg11[%c1_194, %c0_195, %c0_196] : memref<2x1x32xf32, #tpu.memory_space<vmem>>, vector<1x1x32xf32>
    %240 = vector.shape_cast %239 : vector<1x1x32xf32> to vector<1x32xf32>
    %c1_197 = arith.constant 1 : index
    %c0_198 = arith.constant 0 : index
    %c0_199 = arith.constant 0 : index
    %241 = vector.load %arg12[%c1_197, %c0_198, %c0_199] : memref<2x1x32xf32, #tpu.memory_space<vmem>>, vector<1x1x32xf32>
    %242 = vector.shape_cast %241 : vector<1x1x32xf32> to vector<1x32xf32>
    %cst_200 = arith.constant dense<0.000000e+00> : vector<16xf32>
    %243 = vector.multi_reduction <add>, %238, %cst_200 [1] : vector<16x32xf32> to vector<16xf32>
    %244 = vector.shape_cast %243 : vector<16xf32> to vector<16x1xf32>
    %cst_201 = arith.constant 3.200000e+01 : f32
    %245 = vector.broadcast %cst_201 : f32 to vector<16x1xf32>
    %246 = arith.divf %244, %245 : vector<16x1xf32>
    %247 = vector.broadcast %246 : vector<16x1xf32> to vector<16x32xf32>
    %248 = arith.subf %238, %247 : vector<16x32xf32>
    %249 = arith.mulf %248, %248 : vector<16x32xf32>
    %cst_202 = arith.constant dense<0.000000e+00> : vector<16xf32>
    %250 = vector.multi_reduction <add>, %249, %cst_202 [1] : vector<16x32xf32> to vector<16xf32>
    %251 = vector.shape_cast %250 : vector<16xf32> to vector<16x1xf32>
    %cst_203 = arith.constant 3.200000e+01 : f32
    %252 = vector.broadcast %cst_203 : f32 to vector<16x1xf32>
    %253 = arith.divf %251, %252 : vector<16x1xf32>
    %cst_204 = arith.constant 9.99999974E-6 : f32
    %254 = vector.broadcast %cst_204 : f32 to vector<16x1xf32>
    %255 = arith.addf %253, %254 : vector<16x1xf32>
    %256 = math.rsqrt %255 : vector<16x1xf32>
    %257 = vector.broadcast %256 : vector<16x1xf32> to vector<16x32xf32>
    %258 = arith.mulf %248, %257 : vector<16x32xf32>
    %259 = vector.broadcast %240 : vector<1x32xf32> to vector<16x32xf32>
    %260 = arith.mulf %258, %259 : vector<16x32xf32>
    %261 = vector.broadcast %242 : vector<1x32xf32> to vector<16x32xf32>
    %262 = arith.addf %260, %261 : vector<16x32xf32>
    %c1_205 = arith.constant 1 : index
    %c0_206 = arith.constant 0 : index
    %c0_207 = arith.constant 0 : index
    %263 = vector.load %arg13[%c1_205, %c0_206, %c0_207] : memref<2x32x64xf32, #tpu.memory_space<vmem>>, vector<1x32x64xf32>
    %264 = vector.shape_cast %263 : vector<1x32x64xf32> to vector<32x64xf32>
    %cst_208 = arith.constant dense<0.000000e+00> : vector<16x64xf32>
    %265 = tpu.matmul %262, %264, %cst_208 {dimension_numbers = #tpu.dot_dimension_numbers<[1], [0], [0], [1], [0, 0, 1, 1], [], []>} : vector<16x32xf32>, vector<32x64xf32>, vector<16x64xf32> -> vector<16x64xf32>
    %c1_209 = arith.constant 1 : index
    %c0_210 = arith.constant 0 : index
    %c0_211 = arith.constant 0 : index
    %266 = vector.load %arg14[%c1_209, %c0_210, %c0_211] : memref<2x1x64xf32, #tpu.memory_space<vmem>>, vector<1x1x64xf32>
    %267 = vector.shape_cast %266 : vector<1x1x64xf32> to vector<1x64xf32>
    %268 = vector.broadcast %267 : vector<1x64xf32> to vector<16x64xf32>
    %269 = arith.addf %265, %268 : vector<16x64xf32>
    %cst_212 = arith.constant 0.000000e+00 : f32
    %270 = vector.broadcast %cst_212 : f32 to vector<16x64xf32>
    %271 = arith.maximumf %269, %270 : vector<16x64xf32>
    %c1_213 = arith.constant 1 : index
    %c0_214 = arith.constant 0 : index
    %c0_215 = arith.constant 0 : index
    %272 = vector.load %arg15[%c1_213, %c0_214, %c0_215] : memref<2x64x32xf32, #tpu.memory_space<vmem>>, vector<1x64x32xf32>
    %273 = vector.shape_cast %272 : vector<1x64x32xf32> to vector<64x32xf32>
    %cst_216 = arith.constant dense<0.000000e+00> : vector<16x32xf32>
    %274 = tpu.matmul %271, %273, %cst_216 {dimension_numbers = #tpu.dot_dimension_numbers<[1], [0], [0], [1], [0, 0, 1, 1], [], []>} : vector<16x64xf32>, vector<64x32xf32>, vector<16x32xf32> -> vector<16x32xf32>
    %c1_217 = arith.constant 1 : index
    %c0_218 = arith.constant 0 : index
    %c0_219 = arith.constant 0 : index
    %275 = vector.load %arg16[%c1_217, %c0_218, %c0_219] : memref<2x1x32xf32, #tpu.memory_space<vmem>>, vector<1x1x32xf32>
    %276 = vector.shape_cast %275 : vector<1x1x32xf32> to vector<1x32xf32>
    %277 = vector.broadcast %276 : vector<1x32xf32> to vector<16x32xf32>
    %278 = arith.addf %274, %277 : vector<16x32xf32>
    %279 = arith.addf %262, %278 : vector<16x32xf32>
    %c1_220 = arith.constant 1 : index
    %c0_221 = arith.constant 0 : index
    %c0_222 = arith.constant 0 : index
    %280 = vector.load %arg17[%c1_220, %c0_221, %c0_222] : memref<2x1x32xf32, #tpu.memory_space<vmem>>, vector<1x1x32xf32>
    %281 = vector.shape_cast %280 : vector<1x1x32xf32> to vector<1x32xf32>
    %c1_223 = arith.constant 1 : index
    %c0_224 = arith.constant 0 : index
    %c0_225 = arith.constant 0 : index
    %282 = vector.load %arg18[%c1_223, %c0_224, %c0_225] : memref<2x1x32xf32, #tpu.memory_space<vmem>>, vector<1x1x32xf32>
    %283 = vector.shape_cast %282 : vector<1x1x32xf32> to vector<1x32xf32>
    %cst_226 = arith.constant dense<0.000000e+00> : vector<16xf32>
    %284 = vector.multi_reduction <add>, %279, %cst_226 [1] : vector<16x32xf32> to vector<16xf32>
    %285 = vector.shape_cast %284 : vector<16xf32> to vector<16x1xf32>
    %cst_227 = arith.constant 3.200000e+01 : f32
    %286 = vector.broadcast %cst_227 : f32 to vector<16x1xf32>
    %287 = arith.divf %285, %286 : vector<16x1xf32>
    %288 = vector.broadcast %287 : vector<16x1xf32> to vector<16x32xf32>
    %289 = arith.subf %279, %288 : vector<16x32xf32>
    %290 = arith.mulf %289, %289 : vector<16x32xf32>
    %cst_228 = arith.constant dense<0.000000e+00> : vector<16xf32>
    %291 = vector.multi_reduction <add>, %290, %cst_228 [1] : vector<16x32xf32> to vector<16xf32>
    %292 = vector.shape_cast %291 : vector<16xf32> to vector<16x1xf32>
    %cst_229 = arith.constant 3.200000e+01 : f32
    %293 = vector.broadcast %cst_229 : f32 to vector<16x1xf32>
    %294 = arith.divf %292, %293 : vector<16x1xf32>
    %cst_230 = arith.constant 9.99999974E-6 : f32
    %295 = vector.broadcast %cst_230 : f32 to vector<16x1xf32>
    %296 = arith.addf %294, %295 : vector<16x1xf32>
    %297 = math.rsqrt %296 : vector<16x1xf32>
    %298 = vector.broadcast %297 : vector<16x1xf32> to vector<16x32xf32>
    %299 = arith.mulf %289, %298 : vector<16x32xf32>
    %300 = vector.broadcast %281 : vector<1x32xf32> to vector<16x32xf32>
    %301 = arith.mulf %299, %300 : vector<16x32xf32>
    %302 = vector.broadcast %283 : vector<1x32xf32> to vector<16x32xf32>
    %303 = arith.addf %301, %302 : vector<16x32xf32>
    %c0_231 = arith.constant 0 : index
    %c0_232 = arith.constant 0 : index
    %304 = vector.load %arg19[%c0_231, %c0_232] : memref<16x32xf32, #tpu.memory_space<vmem>>, vector<16x32xf32>
    tpu.vector_store %arg19[%c0_231, %c0_232], %303 {strides = array<i32>} : memref<16x32xf32, #tpu.memory_space<vmem>>, vector<16x32xf32>,
    return
  }
  func.func @transform_0(%arg0: i32) -> (i32, i32) {
    %c0_i32 = arith.constant 0 : i32
    %c0_i32_0 = arith.constant 0 : i32
    return %arg0, %c0_i32 : i32, i32
  }
  func.func @transform_1(%arg0: i32) -> (i32, i32) {
    %c0_i32 = arith.constant 0 : i32
    %c0_i32_0 = arith.constant 0 : i32
    %c0_i32_1 = arith.constant 0 : i32
    return %c0_i32, %c0_i32_0 : i32, i32
  }
  func.func @transform_2(%arg0: i32) -> (i32, i32, i32, i32) {
    %c0_i32 = arith.constant 0 : i32
    %c0_i32_0 = arith.constant 0 : i32
    %c0_i32_1 = arith.constant 0 : i32
    %c0_i32_2 = arith.constant 0 : i32
    %c0_i32_3 = arith.constant 0 : i32
    return %c0_i32, %c0_i32_0, %c0_i32_1, %c0_i32_2 : i32, i32, i32, i32
  }
  func.func @transform_3(%arg0: i32) -> (i32, i32, i32, i32) {
    %c0_i32 = arith.constant 0 : i32
    %c0_i32_0 = arith.constant 0 : i32
    %c0_i32_1 = arith.constant 0 : i32
    %c0_i32_2 = arith.constant 0 : i32
    %c0_i32_3 = arith.constant 0 : i32
    return %c0_i32, %c0_i32_0, %c0_i32_1, %c0_i32_2 : i32, i32, i32, i32
  }
  func.func @transform_4(%arg0: i32) -> (i32, i32, i32, i32) {
    %c0_i32 = arith.constant 0 : i32
    %c0_i32_0 = arith.constant 0 : i32
    %c0_i32_1 = arith.constant 0 : i32
    %c0_i32_2 = arith.constant 0 : i32
    %c0_i32_3 = arith.constant 0 : i32
    return %c0_i32, %c0_i32_0, %c0_i32_1, %c0_i32_2 : i32, i32, i32, i32
  }
  func.func @transform_5(%arg0: i32) -> (i32, i32, i32, i32) {
    %c0_i32 = arith.constant 0 : i32
    %c0_i32_0 = arith.constant 0 : i32
    %c0_i32_1 = arith.constant 0 : i32
    %c0_i32_2 = arith.constant 0 : i32
    %c0_i32_3 = arith.constant 0 : i32
    return %c0_i32, %c0_i32_0, %c0_i32_1, %c0_i32_2 : i32, i32, i32, i32
  }
  func.func @transform_6(%arg0: i32) -> (i32, i32, i32, i32) {
    %c0_i32 = arith.constant 0 : i32
    %c0_i32_0 = arith.constant 0 : i32
    %c0_i32_1 = arith.constant 0 : i32
    %c0_i32_2 = arith.constant 0 : i32
    %c0_i32_3 = arith.constant 0 : i32
    return %c0_i32, %c0_i32_0, %c0_i32_1, %c0_i32_2 : i32, i32, i32, i32
  }
  func.func @transform_7(%arg0: i32) -> (i32, i32, i32, i32) {
    %c0_i32 = arith.constant 0 : i32
    %c0_i32_0 = arith.constant 0 : i32
    %c0_i32_1 = arith.constant 0 : i32
    %c0_i32_2 = arith.constant 0 : i32
    %c0_i32_3 = arith.constant 0 : i32
    return %c0_i32, %c0_i32_0, %c0_i32_1, %c0_i32_2 : i32, i32, i32, i32
  }
  func.func @transform_8(%arg0: i32) -> (i32, i32, i32, i32) {
    %c0_i32 = arith.constant 0 : i32
    %c0_i32_0 = arith.constant 0 : i32
    %c0_i32_1 = arith.constant 0 : i32
    %c0_i32_2 = arith.constant 0 : i32
    %c0_i32_3 = arith.constant 0 : i32
    return %c0_i32, %c0_i32_0, %c0_i32_1, %c0_i32_2 : i32, i32, i32, i32
  }
  func.func @transform_9(%arg0: i32) -> (i32, i32, i32) {
    %c0_i32 = arith.constant 0 : i32
    %c0_i32_0 = arith.constant 0 : i32
    %c0_i32_1 = arith.constant 0 : i32
    %c0_i32_2 = arith.constant 0 : i32
    return %c0_i32, %c0_i32_0, %c0_i32_1 : i32, i32, i32
  }
  func.func @transform_10(%arg0: i32) -> (i32, i32, i32) {
    %c0_i32 = arith.constant 0 : i32
    %c0_i32_0 = arith.constant 0 : i32
    %c0_i32_1 = arith.constant 0 : i32
    %c0_i32_2 = arith.constant 0 : i32
    return %c0_i32, %c0_i32_0, %c0_i32_1 : i32, i32, i32
  }
  func.func @transform_11(%arg0: i32) -> (i32, i32, i32) {
    %c0_i32 = arith.constant 0 : i32
    %c0_i32_0 = arith.constant 0 : i32
    %c0_i32_1 = arith.constant 0 : i32
    %c0_i32_2 = arith.constant 0 : i32
    return %c0_i32, %c0_i32_0, %c0_i32_1 : i32, i32, i32
  }
  func.func @transform_12(%arg0: i32) -> (i32, i32, i32) {
    %c0_i32 = arith.constant 0 : i32
    %c0_i32_0 = arith.constant 0 : i32
    %c0_i32_1 = arith.constant 0 : i32
    %c0_i32_2 = arith.constant 0 : i32
    return %c0_i32, %c0_i32_0, %c0_i32_1 : i32, i32, i32
  }
  func.func @transform_13(%arg0: i32) -> (i32, i32, i32) {
    %c0_i32 = arith.constant 0 : i32
    %c0_i32_0 = arith.constant 0 : i32
    %c0_i32_1 = arith.constant 0 : i32
    %c0_i32_2 = arith.constant 0 : i32
    return %c0_i32, %c0_i32_0, %c0_i32_1 : i32, i32, i32
  }
  func.func @transform_14(%arg0: i32) -> (i32, i32, i32) {
    %c0_i32 = arith.constant 0 : i32
    %c0_i32_0 = arith.constant 0 : i32
    %c0_i32_1 = arith.constant 0 : i32
    %c0_i32_2 = arith.constant 0 : i32
    return %c0_i32, %c0_i32_0, %c0_i32_1 : i32, i32, i32
  }
  func.func @transform_15(%arg0: i32) -> (i32, i32, i32) {
    %c0_i32 = arith.constant 0 : i32
    %c0_i32_0 = arith.constant 0 : i32
    %c0_i32_1 = arith.constant 0 : i32
    %c0_i32_2 = arith.constant 0 : i32
    return %c0_i32, %c0_i32_0, %c0_i32_1 : i32, i32, i32
  }
  func.func @transform_16(%arg0: i32) -> (i32, i32, i32) {
    %c0_i32 = arith.constant 0 : i32
    %c0_i32_0 = arith.constant 0 : i32
    %c0_i32_1 = arith.constant 0 : i32
    %c0_i32_2 = arith.constant 0 : i32
    return %c0_i32, %c0_i32_0, %c0_i32_1 : i32, i32, i32
  }
  func.func @transform_17(%arg0: i32) -> (i32, i32, i32) {
    %c0_i32 = arith.constant 0 : i32
    %c0_i32_0 = arith.constant 0 : i32
    %c0_i32_1 = arith.constant 0 : i32
    %c0_i32_2 = arith.constant 0 : i32
    return %c0_i32, %c0_i32_0, %c0_i32_1 : i32, i32, i32
  }
  func.func @transform_18(%arg0: i32) -> (i32, i32) {
    %c0_i32 = arith.constant 0 : i32
    %c0_i32_0 = arith.constant 0 : i32
    return %arg0, %c0_i32 : i32, i32
  }
}

</mosaic_0001>

<bundles_post_ra>
// kernel: tpu_custom_call.1
= control target key start
LH: loop header
LB: loop body
LE: loop exit
PB: predicated region body
PF: predicated region fallthrough
CT: control target
= control target key end

     0   :  { %s4336_s0 = inlined_call_operand.vmem [shape: f32[16,32], index: 0, kind: input, shape index: {}]   ;;  %s4337_s1 = inlined_call_operand.vmem [shape: f32[16,16], index: 1, kind: input, shape index: {}]   ;;  %s4338_s2 = inlined_call_operand.vmem [shape: f32[2,2,32,16], index: 2, kind: input, shape index: {}]   ;;  %s4339_s3 = inlined_call_operand.vmem [shape: f32[2,2,32,16], index: 3, kind: input, shape index: {}]   ;;  %s4340_s4 = inlined_call_operand.vmem [shape: f32[2,2,32,16], index: 4, kind: input, shape index: {}]   ;;  %s4341_s5 = inlined_call_operand.vmem [shape: f32[2,2,1,16], index: 5, kind: input, shape index: {}]   ;;  %s4342_s6 = inlined_call_operand.vmem [shape: f32[2,2,1,16], index: 6, kind: input, shape index: {}]   ;;  %s4343_s7 = inlined_call_operand.vmem [shape: f32[2,2,1,16], index: 7, kind: input, shape index: {}]   ;;  %s4344_s8 = inlined_call_operand.vmem [shape: f32[2,2,16,32], index: 8, kind: input, shape index: {}]   ;;  %s4345_s9 = inlined_call_operand.vmem [shape: f32[2,1,32], index: 9, kind: input, shape index: {}]   ;;  %s4346_s10 = inlined_call_operand.vmem [shape: f32[2,1,32], index: 10, kind: input, shape index: {}]   ;;  %s4347_s11 = inlined_call_operand.vmem [shape: f32[2,1,32], index: 11, kind: input, shape index: {}]   ;;  %s4348_s12 = inlined_call_operand.vmem [shape: f32[2,32,64], index: 12, kind: input, shape index: {}]   ;;  %s4349_s13 = inlined_call_operand.vmem [shape: f32[2,1,64], index: 13, kind: input, shape index: {}]   ;;  %s4350_s14 = inlined_call_operand.vmem [shape: f32[2,64,32], index: 14, kind: input, shape index: {}]   ;;  %s4351_s15 = inlined_call_operand.vmem [shape: f32[2,1,32], index: 15, kind: input, shape index: {}]   ;;  %s4352_s16 = inlined_call_operand.vmem [shape: f32[2,1,32], index: 16, kind: input, shape index: {}]   ;;  %s4353_s17 = inlined_call_operand.vmem [shape: f32[2,1,32], index: 17, kind: input, shape index: {}]   ;;  %s4354_s18 = inlined_call_operand.hbm [shape: f32[16,32], index: 18, kind: output, shape index: {}]  }
   0x1   :  { %4358 = sst [smem:[#allocation5_spill]] %s4336_s0 }
   0x2   :  { %4359 = sst [smem:[#allocation6_spill]] %s4337_s1 }
   0x3   :  { %4360 = sst [smem:[#allocation7_spill]] %s4338_s2 }
   0x4   :  { %v165_v0 = vld [vmem:[%s4339_s3] sm:$0xff]  ;;  %v166_v1 = vld [vmem:[%s4339_s3 + $0x8] sm:$0xff]  ;;  %v167_v2 = vld [vmem:[%s4339_s3 + $0x10] sm:$0xff]  ;;  %vm83_vm0 = vcmask 261120   ;;  %s4361_s2 = sld [smem:[#allocation5_spill]]  ;;  %s4362_s25 = sld [smem:[#allocation7_spill]] }
   0x5   :  { %v3452_v3 = vpack.c.bf16 %v166_v1, %v165_v0  ;;  %v168_v4 = vld [vmem:[%s4339_s3 + $0x18] sm:$0xff] }
   0x6   :  { %v3456_v7 = vpack.c.bf16 %v168_v4, %v167_v2 }
   0x7   :  { %3453 = vmatprep.subr.bf16.mxu1 %v3452_v3 }
   0xa   :  { %v3840_v5 = vld [vmem:[%s4361_s2] sm:$0xff]  ;;  %v73_v8 = vld [vmem:[%s4362_s25 + $0x8] sm:$0xff]  ;;  %v74_v9 = vld [vmem:[%s4362_s25 + $0x10] sm:$0xff] }
   0xb   :  { %v72_v6 = vld [vmem:[%s4362_s25] sm:$0xff]  ;;  %3187 = vmatprep.mubr.msk.f32.mxu1 %vm83_vm0, %v3840_v5  ;;  %3176 = vmatprep.mubr.msk.f32.mxu0 %vm83_vm0, %v3840_v5  ;;  %v75_v11 = vld [vmem:[%s4362_s25 + $0x18] sm:$0xff] }
   0xc   :  { %v3444_v10 = vpack.c.bf16 %v73_v8, %v72_v6 }
   0xd   :  { %23 = vsyncpa [#allocation3], 0  ;;  %3455 = vmatpush3.bf16.msra.mxu1 %v3452_v3  ;;  %v3448_v12 = vpack.c.bf16 %v75_v11, %v74_v9  ;;  %v3861_v13 = vld [vmem:[%s4361_s2 + $0x8] sm:$0xff]  ;;  %v2860_v14 = vld [vmem:[%s4342_s6] ss:$0 sm:$0xff]  ;;  %vm337_vm1 = vcmask 130048  }
   0xe   :  { %3457 = vmatprep.subr.bf16.mxu1 %v3456_v7  ;;  %3445 = vmatprep.subr.bf16.mxu0 %v3444_v10  ;;  %v2857_v18 = vld [vmem:[%s4341_s5] ss:$0 sm:$0xff]  ;;  %vm3877_vm2 = vmpackc.low %vm337_vm1, %vm337_vm1  ;;  %v252_v27 = vld [vmem:[%s4340_s4 + $0x8] sm:$0xff]  ;;  %s4365_s20 = sld [smem:[#allocation6_spill]]  ;;  %vm1317_vm3 = vcmask 523264   ;;  %s3727_s27 = smov [#allocation2]  }
   0xf   :  { %3447 = vmatpush3.bf16.msra.mxu0 %v3444_v10  ;;  %v251_v26 = vld [vmem:[%s4340_s4] sm:$0xff]  ;;  %v253_v28 = vld [vmem:[%s4340_s4 + $0x10] sm:$0xff]  ;;  %v254_v30 = vld [vmem:[%s4340_s4 + $0x18] sm:$0xff]  ;;  %s2845_s28 = sshll.u32 %s3727_s27, 4  ;;  %s2846_s28 = int_to_ptr.vmem [resolvable:$true] %s2845_s28 }
  0x10   :  { %3449 = vmatprep.subr.bf16.mxu0 %v3448_v12  ;;  %v3460_v29 = vpack.c.bf16 %v252_v27, %v251_v26  ;;  %v3464_v31 = vpack.c.bf16 %v254_v30, %v253_v28  ;;  %v2863_v53 = vld [vmem:[%s4343_s7] ss:$0 sm:$0xff]  ;;  %v2883_v59 = vld [vmem:[%s4339_s3 + $0x28] sm:$0xff]  ;;  %v2884_v60 = vld [vmem:[%s4339_s3 + $0x30] sm:$0xff]  ;;  %s3703_s29 = scalar_lea.vmem %s2846_s28, 256  ;;  %p3708_p1 = scmp.lt.s32.totalorder %s2846_s28, %s2846_s28 }
  0x11   :  { %3459 = vmatpush3.bf16.msra.mxu1 %v3456_v7  ;;  %v2882_v58 = vld [vmem:[%s4339_s3 + $0x20] sm:$0xff]  ;;  %v2885_v62 = vld [vmem:[%s4339_s3 + $0x38] sm:$0xff]  ;;  %v533_v0 = vld [vmem:[%s4344_s8 + $0x8] sm:$0xff]  ;;  %p3704_p0 = scmp.ne.s32.totalorder %s2846_s28, %s3703_s29  ;;  %p3709_p2 = scmp.lt.s32.totalorder %s3703_s29, %s3703_s29 }
  0x12   :  { %v3490_v61 = vpack.c.bf16 %v2883_v59, %v2882_v58  ;;  %v532_v63 = vld [vmem:[%s4344_s8] sm:$0xff]  ;;  %v3494_v1 = vpack.c.bf16 %v2885_v62, %v2884_v60  ;;  %v2875_v11 = vld [vmem:[%s4362_s25 + $0x28] sm:$0xff] }
  0x13   :  { %3451 = vmatpush3.bf16.msra.mxu0 %v3448_v12  ;;  %v3478_v2 = vpack.c.bf16 %v533_v0, %v532_v63  ;;  %v2874_v10 = vld [vmem:[%s4362_s25 + $0x20] sm:$0xff]  ;;  %p3710_p3 = por %p3709_p2, %p3708_p1 }
  0x14   :  { %3188 = vmatmul.mubr.msk.f32.vlgmr.msra.gmra.mrb[0].mxu1 %vm83_vm0, %v3861_v13  ;;  %3461 = vmatprep.subr.bf16.mxu0 %v3460_v29  ;;  %v3906_v34 = vld [vmem:[%s4365_s20] sm:$0xff]  ;;  %v3911_v37 = vld [vmem:[%s4365_s20 + $0x8] sm:$0xff]  ;;  %v3482_v12 = vpack.c.bf16 %v2875_v11, %v2874_v10 }
  0x15   :  { %v2879_v28 = vld [vmem:[%s4341_s5 + $0x1] ss:$0 sm:$0xff]  ;;  %p3711_p4 = pnand %p3710_p3, %p3704_p0 }
  0x16   :  { %3177 = vmatmul.mubr.msk.f32.vlgmr.msra.gmra.mrb[0].mxu0 %vm83_vm0, %v3861_v13  ;;  %v2895_v60 = vld [vmem:[%s4343_s7 + $0x1] ss:$0 sm:$0xff] }
  0x17   :  { %3198 = vmatprep.mubr.msk.f32.mxu0 %vm83_vm0, %v3840_v5  ;;  %3463 = vmatpush3.bf16.msra.mxu0 %v3460_v29 }
  0x18   :  { %3465 = vmatprep.subr.bf16.mxu0 %v3464_v31 }
  0x1b   :  { %3467 = vmatpush3.bf16.msra.mxu0 %v3464_v31 }
  0x1e   :  { %3199 = vmatmul.mubr.msk.f32.vlgmr.msra.gmra.mrb[2].mxu0 %vm83_vm0, %v3861_v13 }
  0xe7   :  { %v3189_v15 = vpop.f32.mrb[0].mxu1 }
  0xe8   :  { %v248_v16 = vadd.f32 %v3189_v15, %v2860_v14  ;;  %v242_v17 = vpop.f32.mrb[1].mxu1  ;;  %v2887_v15 = vld [vmem:[%s4342_s6 + $0x1] ss:$0 sm:$0xff] }
  0xe9   :  { %v243_v19 = vadd.f32 %v2860_v14, %v242_v17  ;;  %v3178_v20 = vpop.f32.mrb[0].mxu0 }
  0xea   :  { %v156_v22 = vpop.f32.mrb[1].mxu0  ;;  %v162_v25 = vadd.f32 %v3178_v20, %v2857_v18  ;;  %v2876_v20 = vld [vmem:[%s4362_s25 + $0x30] sm:$0xff] }
  0xeb   :  { %v3468_v23 = vpack.c.bf16 %v248_v16, %v243_v19  ;;  %v157_v24 = vadd.f32 %v2857_v18, %v156_v22  ;;  %v2877_v22 = vld [vmem:[%s4362_s25 + $0x38] sm:$0xff] }
  0xed   :  { %3470 = vmatprep.subr.msk.bf16.mxu1 %vm3877_vm2, %v3468_v23  ;;  %3205 = vmatprep.mubr.msk.f32.mxu1 %vm337_vm1, %v157_v24 }
  0xee   :  { %3473 = vmatpush3.bf16.xpose.msk.msra.mxu1 %vm3877_vm2, %v3468_v23 }
  0xef   :  { %3491 = vmatprep.subr.bf16.mxu1 %v3490_v61 }
  0xf1   :  { %v3200_v52 = vpop.f32.mrb[2].mxu0 }
  0xf2   :  { %v328_v54 = vpop.f32.mrb[3].mxu0  ;;  %v334_v55 = vadd.f32 %v3200_v52, %v2863_v53 }
  0xf3   :  { %v329_v56 = vadd.f32 %v2863_v53, %v328_v54 }
  0xf5   :  { %3206 = vmatmul.mubr.msk.f32.vlgmr.msra.gmra.mrb[2].mxu1 %vm337_vm1, %v162_v25  ;;  %v3474_v57 = vpack.c.bf16 %v334_v55, %v329_v56  ;;  %v3486_v25 = vpack.c.bf16 %v2877_v22, %v2876_v20 }
  0xf6   :  { %3241 = vmatprep.mubr.msk.f32.mxu1 %vm83_vm0, %v3840_v5  ;;  %3493 = vmatpush3.bf16.msra.mxu1 %v3490_v61 }
  0xf7   :  { %3475 = vmatprep.subr.bf16.mxu0 %v3474_v57  ;;  %3495 = vmatprep.subr.bf16.mxu1 %v3494_v1 }
  0xf8   :  { %3477 = vmatpush3.bf16.msra.mxu0 %v3474_v57 }
  0xf9   :  { %3479 = vmatprep.subr.bf16.mxu0 %v3478_v2 }
  0xfa   :  { %3497 = vmatpush3.bf16.msra.mxu1 %v3494_v1  ;;  %v2904_v1 = vld [vmem:[%s4344_s8 + $0x10] sm:$0xff] }
  0xfd   :  { %3242 = vmatmul.mubr.msk.f32.vlgmr.msra.gmra.mrb[4].mxu1 %vm83_vm0, %v3861_v13 }
 0x1c8   :  { %v3207_v32 = vpop.f32.mrb[2].mxu1 }
 0x1c9   :  { %v416_v33 = vpop.f32.mrb[3].mxu1  ;;  %v426_v35 = vmul.f32 0.25, %v3207_v32 }
 0x1ca   :  { %v425_v36 = vmul.f32 0.25, %v416_v33  ;;  %v2890_v33 = vld [vmem:[%s4340_s4 + $0x20] sm:$0xff] }
 0x1cb   :  { %v428_v40 = vadd.f32 %v426_v35, %v3911_v37  ;;  %v2891_v35 = vld [vmem:[%s4340_s4 + $0x28] sm:$0xff] }
 0x1cc   :  { %v427_v38 = vadd.f32 %v425_v36, %v3906_v34  ;;  %v2892_v36 = vld [vmem:[%s4340_s4 + $0x30] sm:$0xff] }
 0x1cd   :  { %v432_v41 = vsel %vm337_vm1, %v428_v40, -inf }
 0x1ce   :  { %v429_v39 = vsel %vm337_vm1, %v427_v38, -inf }
 0x1cf   :  { %430 = vmax.xlane.f32.xlu0 %v429_v39  ;;  %v2893_v39 = vld [vmem:[%s4340_s4 + $0x38] sm:$0xff] }
 0x1d0   :  { %v3243_v14 = vpop.f32.mrb[4].mxu1 }
 0x1d1   :  { %v790_v16 = vadd.f32 %v3243_v14, %v2887_v15  ;;  %v784_v17 = vpop.f32.mrb[5].mxu1  ;;  %v2856_v14 = vld [vmem:[%s4345_s9] ss:$0 sm:$0xff] }
 0x1d2   :  { %v785_v18 = vadd.f32 %v2887_v15, %v784_v17 }
 0x1d3   :  { %433 = vmax.xlane.f32.xlu0 %v432_v41 }
 0x1d4   :  { %v3506_v19 = vpack.c.bf16 %v790_v16, %v785_v18 }
 0x1d6   :  { %3508 = vmatprep.subr.msk.bf16.mxu1 %vm3877_vm2, %v3506_v19 }
 0x1d7   :  { %3511 = vmatpush3.bf16.xpose.msk.msra.mxu1 %vm3877_vm2, %v3506_v19 }
 0x25c   :  { %v431_v42 = vpop.xlane.xlu0 %430 }
 0x25d   :  { %v435_v43 = vsub.f32 %v427_v38, %v431_v42  ;;  %v3498_v38 = vpack.c.bf16 %v2891_v35, %v2890_v33 }
 0x25f   :  { %v437_v44 = vmul.f32 1.442695, %v435_v43 }
 0x260   :  { %v434_v45 = vpop.xlane.xlu0 %433 }
 0x261   :  { %3655 = vpow2.f32 %v437_v44  ;;  %v436_v46 = vsub.f32 %v428_v40, %v434_v45  ;;  %v3502_v40 = vpack.c.bf16 %v2893_v39, %v2892_v36  ;;  %v1209_v36 = vld [vmem:[%s4348_s12 + $0x8] sm:$0xff]  ;;  %v1210_v39 = vld [vmem:[%s4348_s12 + $0x10] sm:$0xff] }
 0x263   :  { %v439_v47 = vmul.f32 1.442695, %v436_v46 }
 0x265   :  { %3657 = vpow2.f32 %v439_v47 }
 0x26b   :  { %v3656_v48 = vpop.eup %3655 }
 0x26c   :  { %v441_v49 = vsel %vm337_vm1, %v3656_v48, 0.0 }
 0x26d   :  { %442 = vadd.xlane.f32.xlu1 %v441_v49 }
 0x26f   :  { %v3658_v50 = vpop.eup %3657 }
 0x270   :  { %v444_v51 = vsel %vm337_vm1, %v3658_v50, 0.0 }
 0x271   :  { %445 = vadd.xlane.f32.xlu1 %v444_v51 }
 0x2fa   :  { %v443_v3 = vpop.xlane.xlu1 %442 }
 0x2fb   :  { %3659 = vrcp.f32 %v443_v3 }
 0x2fe   :  { %v446_v4 = vpop.xlane.xlu1 %445 }
 0x2ff   :  { %3661 = vrcp.f32 %v446_v4 }
 0x305   :  { %v3660_v6 = vpop.eup %3659 }
 0x306   :  { %v448_v7 = vmul.f32 %v3660_v6, %v3656_v48 }
 0x308   :  { %3212 = vmatprep.mubr.msk.f32.mxu0 %vm337_vm1, %v448_v7 }
 0x309   :  { %v3662_v8 = vpop.eup %3661 }
 0x30a   :  { %v450_v9 = vmul.f32 %v3662_v8, %v3658_v50 }
 0x30c   :  { %3213 = vmatmul.mubr.msk.f32.vlgmr.msra.gmra.mrb[4].mxu0 %vm337_vm1, %v450_v9 }
 0x30d   :  { %3481 = vmatpush3.bf16.msra.mxu0 %v3478_v2  ;;  %v2905_v2 = vld [vmem:[%s4344_s8 + $0x18] sm:$0xff] }
 0x30e   :  { %3483 = vmatprep.subr.bf16.mxu0 %v3482_v12  ;;  %v3516_v3 = vpack.c.bf16 %v2905_v2, %v2904_v1 }
 0x310   :  { %3517 = vmatprep.subr.bf16.mxu1 %v3516_v3 }
 0x3df   :  { %v3214_v23 = vpop.f32.mrb[4].mxu0 }
 0x3e0   :  { %v523_v24 = vpop.f32.mrb[5].mxu0 }
 0x3e1   :  { %3219 = vmatprep.mubr.msk.f32.mxu0 %vm337_vm1, %v523_v24 }
 0x3e2   :  { %3220 = vmatmul.mubr.msk.f32.vlgmr.msra.gmra.mrb[6].mxu0 %vm337_vm1, %v3214_v23 }
 0x3e3   :  { %3485 = vmatpush3.bf16.msra.mxu0 %v3482_v12  ;;  %3230 = vmatprep.mubr.msk.f32.mxu0 %vm83_vm0, %v3840_v5 }
 0x3e4   :  { %3487 = vmatprep.subr.bf16.mxu0 %v3486_v25 }
 0x3e7   :  { %3489 = vmatpush3.bf16.msra.mxu0 %v3486_v25 }
 0x3e8   :  { %3499 = vmatprep.subr.bf16.mxu0 %v3498_v38 }
 0x3ea   :  { %3231 = vmatmul.mubr.msk.f32.vlgmr.msra.gmra.mrb[8].mxu0 %vm83_vm0, %v3861_v13 }
 0x3eb   :  { %3252 = vmatprep.mubr.msk.f32.mxu0 %vm83_vm0, %v3840_v5  ;;  %3501 = vmatpush3.bf16.msra.mxu0 %v3498_v38 }
 0x3ec   :  { %3503 = vmatprep.subr.bf16.mxu0 %v3502_v40 }
 0x3ef   :  { %3505 = vmatpush3.bf16.msra.mxu0 %v3502_v40  ;;  %v1211_v40 = vld [vmem:[%s4348_s12 + $0x18] sm:$0xff] }
 0x3f2   :  { %3253 = vmatmul.mubr.msk.f32.vlgmr.msra.gmra.mrb[10].mxu0 %vm83_vm0, %v3861_v13 }
 0x4b5   :  { %v3971_v26 = vpop.f32.mrb[6].mxu0 }
 0x4b6   :  { %v3973_v27 = vpop.f32.mrb[7].mxu0  ;;  %v616_v15 = vadd.f32 %v3971_v26, %v2856_v14 }
 0x4b7   :  { %v615_v16 = vadd.f32 %v2856_v14, %v3973_v27 }
 0x4bd   :  { %v3232_v29 = vpop.f32.mrb[8].mxu0 }
 0x4be   :  { %v696_v30 = vpop.f32.mrb[9].mxu0  ;;  %v702_v32 = vadd.f32 %v3232_v29, %v2879_v28 }
 0x4bf   :  { %v697_v31 = vadd.f32 %v2879_v28, %v696_v30 }
 0x4c1   :  { %3259 = vmatprep.mubr.msk.f32.mxu1 %vm337_vm1, %v697_v31 }
 0x4c2   :  { %3260 = vmatmul.mubr.msk.f32.vlgmr.msra.gmra.mrb[6].mxu1 %vm337_vm1, %v702_v32 }
 0x4c3   :  { %3519 = vmatpush3.bf16.msra.mxu1 %v3516_v3  ;;  %v1308_v3 = vld [vmem:[%s4350_s14 + $0x30] sm:$0xff] }
 0x4c5   :  { %v3254_v59 = vpop.f32.mrb[10].mxu0 }
 0x4c6   :  { %v872_v61 = vpop.f32.mrb[11].mxu0  ;;  %v878_v62 = vadd.f32 %v3254_v59, %v2895_v60 }
 0x4c7   :  { %v873_v63 = vadd.f32 %v2895_v60, %v872_v61 }
 0x4c9   :  { %v3512_v0 = vpack.c.bf16 %v878_v62, %v873_v63  ;;  %v2909_v62 = vld [vmem:[%s4347_s11] ss:$0 sm:$0xff] }
 0x4cb   :  { %3513 = vmatprep.subr.bf16.mxu0 %v3512_v0 }
 0x4cc   :  { %3515 = vmatpush3.bf16.msra.mxu0 %v3512_v0 }
 0x595   :  { %v3261_v41 = vpop.f32.mrb[6].mxu1 }
 0x596   :  { %v969_v42 = vmul.f32 0.25, %v3261_v41  ;;  %v959_v43 = vpop.f32.mrb[7].mxu1  ;;  %v3524_v41 = vpack.c.bf16 %v1211_v40, %v1210_v39  ;;  %v2937_v39 = vld [vmem:[%s4340_s4 + $0x48] sm:$0xff] }
 0x597   :  { %v968_v44 = vmul.f32 0.25, %v959_v43  ;;  %v1303_v43 = vld [vmem:[%s4350_s14 + $0x8] sm:$0xff] }
 0x598   :  { %v971_v45 = vadd.f32 %v969_v42, %v3911_v37  ;;  %v1302_v42 = vld [vmem:[%s4350_s14] sm:$0xff] }
 0x599   :  { %v970_v46 = vadd.f32 %v968_v44, %v3906_v34  ;;  %v1304_v44 = vld [vmem:[%s4350_s14 + $0x10] sm:$0xff] }
 0x59a   :  { %v975_v47 = vsel %vm337_vm1, %v971_v45, -inf }
 0x59b   :  { %976 = vmax.xlane.f32.xlu1 %v975_v47  ;;  %v972_v48 = vsel %vm337_vm1, %v970_v46, -inf }
 0x59c   :  { %973 = vmax.xlane.f32.xlu0 %v972_v48  ;;  %v1306_v48 = vld [vmem:[%s4350_s14 + $0x20] sm:$0xff] }
 0x628   :  { %v977_v49 = vpop.xlane.xlu1 %976 }
 0x629   :  { %v979_v50 = vsub.f32 %v971_v45, %v977_v49  ;;  %v974_v51 = vpop.xlane.xlu0 %973  ;;  %v3528_v45 = vpack.c.bf16 %v1303_v43, %v1302_v42  ;;  %v1307_v49 = vld [vmem:[%s4350_s14 + $0x28] sm:$0xff]  ;;  %v2923_v42 = vld [vmem:[%s4362_s25 + $0x58] sm:$0xff] }
 0x62a   :  { %v978_v52 = vsub.f32 %v970_v46, %v974_v51  ;;  %v1305_v46 = vld [vmem:[%s4350_s14 + $0x18] sm:$0xff] }
 0x62b   :  { %v982_v53 = vmul.f32 1.442695, %v979_v50  ;;  %v3532_v47 = vpack.c.bf16 %v1305_v46, %v1304_v44  ;;  %3529 = vmatprep.subr.bf16.mxu1 %v3528_v45  ;;  %v3536_v50 = vpack.c.bf16 %v1307_v49, %v1306_v48  ;;  %v2938_v44 = vld [vmem:[%s4340_s4 + $0x50] sm:$0xff]  ;;  %v2929_v48 = vld [vmem:[%s4339_s3 + $0x48] sm:$0xff] }
 0x62c   :  { %v980_v54 = vmul.f32 1.442695, %v978_v52 }
 0x62d   :  { %3663 = vpow2.f32 %v982_v53 }
 0x62e   :  { %3665 = vpow2.f32 %v980_v54 }
 0x637   :  { %v3664_v55 = vpop.eup %3663 }
 0x638   :  { %v3666_v56 = vpop.eup %3665  ;;  %v987_v57 = vsel %vm337_vm1, %v3664_v55, 0.0 }
 0x639   :  { %988 = vadd.xlane.f32.xlu1 %v987_v57  ;;  %v984_v58 = vsel %vm337_vm1, %v3666_v56, 0.0 }
 0x63a   :  { %985 = vadd.xlane.f32.xlu0 %v984_v58  ;;  %v2908_v58 = vld [vmem:[%s4346_s10] ss:$0 sm:$0xff] }
 0x6c6   :  { %v989_v4 = vpop.xlane.xlu1 %988 }
 0x6c7   :  { %3667 = vrcp.f32 %v989_v4  ;;  %v986_v6 = vpop.xlane.xlu0 %985  ;;  %v1309_v4 = vld [vmem:[%s4350_s14 + $0x38] sm:$0xff] }
 0x6c8   :  { %3669 = vrcp.f32 %v986_v6  ;;  %v3540_v6 = vpack.c.bf16 %v1309_v4, %v1308_v3 }
 0x6d1   :  { %v3668_v7 = vpop.eup %3667 }
 0x6d2   :  { %v3670_v8 = vpop.eup %3669  ;;  %v993_v10 = vmul.f32 %v3668_v7, %v3664_v55  ;;  %v2910_v7 = vld [vmem:[%s4349_s13] ss:$0 sm:$0xff] }
 0x6d3   :  { %v991_v9 = vmul.f32 %v3670_v8, %v3666_v56 }
 0x6d5   :  { %3266 = vmatprep.mubr.msk.f32.mxu0 %vm337_vm1, %v991_v9 }
 0x6d6   :  { %3267 = vmatmul.mubr.msk.f32.vlgmr.msra.gmra.mrb[12].mxu0 %vm337_vm1, %v993_v10 }
 0x7a9   :  { %v3268_v11 = vpop.f32.mrb[12].mxu0 }
 0x7aa   :  { %v1066_v12 = vpop.f32.mrb[13].mxu0 }
 0x7ab   :  { %3273 = vmatprep.mubr.msk.f32.mxu1 %vm337_vm1, %v1066_v12 }
 0x7ac   :  { %3274 = vmatmul.mubr.msk.f32.vlgmr.msra.gmra.mrb[8].mxu1 %vm337_vm1, %v3268_v11 }
 0x7ad   :  { %3531 = vmatpush3.bf16.msra.mxu1 %v3528_v45  ;;  %v2939_v45 = vld [vmem:[%s4340_s4 + $0x58] sm:$0xff] }
 0x7ae   :  { %3533 = vmatprep.subr.bf16.mxu1 %v3532_v47  ;;  %v3564_v46 = vpack.c.bf16 %v2939_v45, %v2938_v44  ;;  %v2959_v45 = vld [vmem:[%s4341_s5 + $0x3] ss:$0 sm:$0xff] }
 0x7b1   :  { %3535 = vmatpush3.bf16.msra.mxu1 %v3532_v47  ;;  %v2928_v47 = vld [vmem:[%s4339_s3 + $0x40] sm:$0xff] }
 0x7b2   :  { %3537 = vmatprep.subr.bf16.mxu1 %v3536_v50  ;;  %v3552_v49 = vpack.c.bf16 %v2929_v48, %v2928_v47 }
 0x7b5   :  { %3539 = vmatpush3.bf16.msra.mxu1 %v3536_v50 }
 0x7b6   :  { %3541 = vmatprep.subr.bf16.mxu1 %v3540_v6 }
 0x7b9   :  { %3543 = vmatpush3.bf16.msra.mxu1 %v3540_v6  ;;  %v2941_v6 = vld [vmem:[%s4343_s7 + $0x2] ss:$0 sm:$0xff] }
 0x87f   :  { %v3275_v17 = vpop.f32.mrb[8].mxu1 }
 0x880   :  { %v1160_v18 = vadd.f32 %v3275_v17, %v616_v15  ;;  %v1150_v19 = vpop.f32.mrb[9].mxu1  ;;  %v2913_v15 = vld [vmem:[%s4351_s15] ss:$0 sm:$0xff] }
 0x881   :  { %v1159_v20 = vadd.f32 %v1150_v19, %v615_v16 }
 0x882   :  { %v1162_v22 = vadd.f32 %v1160_v18, %v3861_v13 }
 0x883   :  { %v1161_v23 = vadd.f32 %v1159_v20, %v3840_v5  ;;  %v1208_v5 = vld [vmem:[%s4348_s12] sm:$0xff] }
 0x884   :  { %v1168_v24 = vsel %vm83_vm0, %v1162_v22, 0.0  ;;  %v3520_v38 = vpack.c.bf16 %v1209_v36, %v1208_v5  ;;  %v2921_v5 = vld [vmem:[%s4362_s25 + $0x48] sm:$0xff] }
 0x885   :  { %1169 = vadd.xlane.f32.xlu1 %v1168_v24  ;;  %v1165_v25 = vsel %vm83_vm0, %v1161_v23, 0.0 }
 0x886   :  { %1166 = vadd.xlane.f32.xlu0 %v1165_v25  ;;  %3521 = vmatprep.subr.bf16.mxu0 %v3520_v38 }
 0x887   :  { %3523 = vmatpush3.bf16.msra.mxu0 %v3520_v38  ;;  %v2936_v38 = vld [vmem:[%s4340_s4 + $0x40] sm:$0xff] }
 0x888   :  { %3525 = vmatprep.subr.bf16.mxu0 %v3524_v41  ;;  %v3560_v40 = vpack.c.bf16 %v2937_v39, %v2936_v38 }
 0x88a   :  { %3561 = vmatprep.subr.bf16.mxu1 %v3560_v40 }
 0x88b   :  { %3527 = vmatpush3.bf16.msra.mxu0 %v3524_v41  ;;  %v2922_v41 = vld [vmem:[%s4362_s25 + $0x50] sm:$0xff] }
 0x88c   :  { %v3548_v43 = vpack.c.bf16 %v2923_v42, %v2922_v41 }
 0x912   :  { %v1170_v28 = vpop.xlane.xlu1 %1169 }
 0x913   :  { %v1173_v29 = vmul.f32 0.03125, %v1170_v28  ;;  %v1167_v30 = vpop.xlane.xlu0 %1166 }
 0x914   :  { %v1172_v26 = vmul.f32 0.03125, %v1167_v30 }
 0x915   :  { %v1175_v31 = vsub.f32 %v1162_v22, %v1173_v29 }
 0x916   :  { %v1174_v27 = vsub.f32 %v1161_v23, %v1172_v26 }
 0x917   :  { %v1177_v32 = vmul.f32 %v1175_v31, %v1175_v31 }
 0x918   :  { %v1176_v33 = vmul.f32 %v1174_v27, %v1174_v27 }
 0x919   :  { %v1181_v35 = vsel %vm83_vm0, %v1177_v32, 0.0 }
 0x91a   :  { %1182 = vadd.xlane.f32.xlu1 %v1181_v35  ;;  %v1178_v13 = vsel %vm83_vm0, %v1176_v33, 0.0 }
 0x91b   :  { %1179 = vadd.xlane.f32.xlu0 %v1178_v13  ;;  %v2920_v13 = vld [vmem:[%s4362_s25 + $0x40] sm:$0xff] }
 0x91c   :  { %v3544_v36 = vpack.c.bf16 %v2921_v5, %v2920_v13  ;;  %v2973_v13 = vld [vmem:[%s4340_s4 + $0x78] sm:$0xff] }
 0x91e   :  { %3545 = vmatprep.subr.bf16.mxu0 %v3544_v36 }
 0x9a7   :  { %v1183_v51 = vpop.xlane.xlu1 %1182 }
 0x9a8   :  { %v1185_v52 = vmul.f32 0.03125, %v1183_v51  ;;  %v1180_v53 = vpop.xlane.xlu0 %1179 }
 0x9a9   :  { %v1184_v54 = vmul.f32 0.03125, %v1180_v53 }
 0x9aa   :  { %v1187_v55 = vadd.f32 1e-05, %v1185_v52 }
 0x9ab   :  { %v1186_v56 = vadd.f32 1e-05, %v1184_v54 }
 0x9ac   :  { %3671 = vrsqrt.f32 %v1187_v55 }
 0x9ad   :  { %3673 = vrsqrt.f32 %v1186_v56 }
 0x9b6   :  { %v3672_v57 = vpop.eup %3671 }
 0x9b7   :  { %v3674_v59 = vpop.eup %3673  ;;  %v1191_v60 = vmul.f32 %v3672_v57, %v1175_v31  ;;  %v2916_v57 = vld [vmem:[%s4352_s16] ss:$0 sm:$0xff] }
 0x9b8   :  { %v1190_v61 = vmul.f32 %v3674_v59, %v1174_v27 }
 0x9b9   :  { %v1199_v63 = vmul.f32 %v2908_v58, %v1191_v60 }
 0x9ba   :  { %v1198_v0 = vmul.f32 %v2908_v58, %v1190_v61  ;;  %v2917_v61 = vld [vmem:[%s4353_s17] ss:$0 sm:$0xff] }
 0x9bb   :  { %v1207_v2 = vadd.f32 %v2909_v62, %v1199_v63 }
 0x9bc   :  { %v1206_v1 = vadd.f32 %v2909_v62, %v1198_v0  ;;  %v2930_v0 = vld [vmem:[%s4339_s3 + $0x50] sm:$0xff] }
 0x9be   :  { %3284 = vmatprep.mubr.msk.f32.mxu0 %vm83_vm0, %v1206_v1 }
 0x9bf   :  { %3285 = vmatmul.mubr.msk.f32.vlgmr.msra.gmra.mrb[14].mxu0 %vm83_vm0, %v1207_v2 }
 0x9c0   :  { %3547 = vmatpush3.bf16.msra.mxu0 %v3544_v36 }
 0x9c1   :  { %3549 = vmatprep.subr.bf16.mxu0 %v3548_v43 }
 0x9c4   :  { %3551 = vmatpush3.bf16.msra.mxu0 %v3548_v43 }
 0x9c5   :  { %3553 = vmatprep.subr.bf16.mxu0 %v3552_v49 }
 0xa92   :  { %v3286_v8 = vpop.f32.mrb[14].mxu0 }
 0xa93   :  { %v1297_v9 = vadd.f32 %v3286_v8, %v2910_v7  ;;  %v1291_v10 = vpop.f32.mrb[15].mxu0 }
 0xa94   :  { %v1292_v11 = vadd.f32 %v2910_v7, %v1291_v10  ;;  %v2925_v7 = vld [vmem:[%s4341_s5 + $0x2] ss:$0 sm:$0xff] }
 0xa95   :  { %v1301_v14 = vmax.f32 %v1297_v9, 0.0 }
 0xa96   :  { %v1300_v12 = vmax.f32 %v1292_v11, 0.0 }
 0xa98   :  { %3303 = vmatprep.mubr.msk.f32.mxu1 %vm1317_vm3, %v1300_v12 }
 0xa99   :  { %3304 = vmatmul.mubr.msk.f32.vlgmr.msra.gmra.mrb[10].mxu1 %vm1317_vm3, %v1301_v14 }
 0xa9a   :  { %3563 = vmatpush3.bf16.msra.mxu1 %v3560_v40 }
 0xa9b   :  { %3565 = vmatprep.subr.bf16.mxu1 %v3564_v46 }
 0xa9e   :  { %3567 = vmatpush3.bf16.msra.mxu1 %v3564_v46 }
 0xb6c   :  { %v3305_v16 = vpop.f32.mrb[10].mxu1 }
 0xb6d   :  { %v1396_v17 = vadd.f32 %v3305_v16, %v2913_v15  ;;  %v1390_v18 = vpop.f32.mrb[11].mxu1 }
 0xb6e   :  { %v1391_v19 = vadd.f32 %v2913_v15, %v1390_v18 }
 0xb6f   :  { %v1400_v20 = vadd.f32 %v1396_v17, %v1207_v2  ;;  %v2933_v17 = vld [vmem:[%s4342_s6 + $0x2] ss:$0 sm:$0xff] }
 0xb70   :  { %v1399_v22 = vadd.f32 %v1391_v19, %v1206_v1  ;;  %v2931_v1 = vld [vmem:[%s4339_s3 + $0x58] sm:$0xff] }
 0xb71   :  { %v1406_v23 = vsel %vm83_vm0, %v1400_v20, 0.0  ;;  %v3556_v4 = vpack.c.bf16 %v2931_v1, %v2930_v0  ;;  %v2950_v1 = vld [vmem:[%s4344_s8 + $0x20] sm:$0xff] }
 0xb72   :  { %1407 = vadd.xlane.f32.xlu1 %v1406_v23  ;;  %v1403_v24 = vsel %vm83_vm0, %v1399_v22, 0.0  ;;  %v2955_v23 = vld [vmem:[%s4362_s25 + $0x68] sm:$0xff] }
 0xb73   :  { %1404 = vadd.xlane.f32.xlu0 %v1403_v24 }
 0xbff   :  { %v1408_v25 = vpop.xlane.xlu1 %1407 }
 0xc00   :  { %v1410_v28 = vmul.f32 0.03125, %v1408_v25  ;;  %v1405_v29 = vpop.xlane.xlu0 %1404 }
 0xc01   :  { %v1409_v30 = vmul.f32 0.03125, %v1405_v29  ;;  %v2956_v29 = vld [vmem:[%s4362_s25 + $0x70] sm:$0xff] }
 0xc02   :  { %v1412_v26 = vsub.f32 %v1400_v20, %v1410_v28 }
 0xc03   :  { %v1411_v31 = vsub.f32 %v1399_v22, %v1409_v30  ;;  %v2954_v22 = vld [vmem:[%s4362_s25 + $0x60] sm:$0xff]  ;;  %v2957_v30 = vld [vmem:[%s4362_s25 + $0x78] sm:$0xff] }
 0xc04   :  { %v1414_v27 = vmul.f32 %v1412_v26, %v1412_v26  ;;  %v3582_v28 = vpack.c.bf16 %v2955_v23, %v2954_v22 }
 0xc05   :  { %v1413_v32 = vmul.f32 %v1411_v31, %v1411_v31 }
 0xc06   :  { %v1418_v33 = vsel %vm83_vm0, %v1414_v27, 0.0  ;;  %v2970_v27 = vld [vmem:[%s4340_s4 + $0x60] sm:$0xff] }
 0xc07   :  { %1419 = vadd.xlane.f32.xlu1 %v1418_v33  ;;  %v1415_v35 = vsel %vm83_vm0, %v1413_v32, 0.0  ;;  %v2971_v32 = vld [vmem:[%s4340_s4 + $0x68] sm:$0xff] }
 0xc08   :  { %1416 = vadd.xlane.f32.xlu0 %v1415_v35  ;;  %v3598_v33 = vpack.c.bf16 %v2971_v32, %v2970_v27  ;;  %v2972_v35 = vld [vmem:[%s4340_s4 + $0x70] sm:$0xff] }
 0xc09   :  { %v3602_v5 = vpack.c.bf16 %v2973_v13, %v2972_v35 }
 0xc94   :  { %v1420_v50 = vpop.xlane.xlu1 %1419 }
 0xc95   :  { %v1422_v51 = vmul.f32 0.03125, %v1420_v50  ;;  %v1417_v52 = vpop.xlane.xlu0 %1416 }
 0xc96   :  { %v1421_v53 = vmul.f32 0.03125, %v1417_v52 }
 0xc97   :  { %v1424_v54 = vadd.f32 1e-05, %v1422_v51 }
 0xc98   :  { %v1423_v55 = vadd.f32 1e-05, %v1421_v53 }
 0xc99   :  { %3675 = vrsqrt.f32 %v1424_v54 }
 0xc9a   :  { %3677 = vrsqrt.f32 %v1423_v55 }
 0xca3   :  { %v3676_v56 = vpop.eup %3675 }
 0xca4   :  { %v3678_v58 = vpop.eup %3677  ;;  %v1428_v59 = vmul.f32 %v3676_v56, %v1412_v26 }
 0xca5   :  { %v1427_v60 = vmul.f32 %v3678_v58, %v1411_v31  ;;  %v3586_v31 = vpack.c.bf16 %v2957_v30, %v2956_v29 }
 0xca6   :  { %v1436_v62 = vmul.f32 %v2916_v57, %v1428_v59 }
 0xca7   :  { %v1435_v63 = vmul.f32 %v2916_v57, %v1427_v60 }
 0xca8   :  { %v4124_v3 = vadd.f32 %v2917_v61, %v1436_v62 }
 0xca9   :  { %v4122_v2 = vadd.f32 %v2917_v61, %v1435_v63 }
 0xcab   :  { %3314 = vmatprep.mubr.msk.f32.mxu0 %vm83_vm0, %v4122_v2  ;;  %3336 = vmatprep.mubr.msk.f32.mxu1 %vm83_vm0, %v4122_v2 }
 0xcac   :  { %3315 = vmatmul.mubr.msk.f32.vlgmr.msra.gmra.mrb[16].mxu0 %vm83_vm0, %v4124_v3  ;;  %3337 = vmatmul.mubr.msk.f32.vlgmr.msra.gmra.mrb[12].mxu1 %vm83_vm0, %v4124_v3 }
 0xcad   :  { %3555 = vmatpush3.bf16.msra.mxu0 %v3552_v49  ;;  %3325 = vmatprep.mubr.msk.f32.mxu0 %vm83_vm0, %v4122_v2  ;;  %v2975_v49 = vld [vmem:[%s4343_s7 + $0x3] ss:$0 sm:$0xff] }
 0xcae   :  { %3557 = vmatprep.subr.bf16.mxu0 %v3556_v4 }
 0xcb1   :  { %3559 = vmatpush3.bf16.msra.mxu0 %v3556_v4  ;;  %v2951_v4 = vld [vmem:[%s4344_s8 + $0x28] sm:$0xff] }
 0xcb4   :  { %3326 = vmatmul.mubr.msk.f32.vlgmr.msra.gmra.mrb[18].mxu0 %vm83_vm0, %v4124_v3 }
 0xd7f   :  { %v3316_v8 = vpop.f32.mrb[16].mxu0  ;;  %v3338_v9 = vpop.f32.mrb[12].mxu1 }
 0xd80   :  { %v1721_v10 = vadd.f32 %v3338_v9, %v2941_v6  ;;  %v1539_v11 = vpop.f32.mrb[17].mxu0  ;;  %v1715_v12 = vpop.f32.mrb[13].mxu1  ;;  %v1545_v26 = vadd.f32 %v3316_v8, %v2925_v7 }
 0xd81   :  { %v1540_v14 = vadd.f32 %v2925_v7, %v1539_v11  ;;  %v1716_v15 = vadd.f32 %v2941_v6, %v1715_v12  ;;  %v3578_v6 = vpack.c.bf16 %v2951_v4, %v2950_v1 }
 0xd83   :  { %v3574_v16 = vpack.c.bf16 %v1721_v10, %v1716_v15  ;;  %3343 = vmatprep.mubr.msk.f32.mxu0 %vm337_vm1, %v1540_v14  ;;  %v2962_v14 = vld [vmem:[%s4339_s3 + $0x60] sm:$0xff]  ;;  %v2963_v15 = vld [vmem:[%s4339_s3 + $0x68] sm:$0xff] }
 0xd85   :  { %3575 = vmatprep.subr.bf16.mxu1 %v3574_v16 }
 0xd86   :  { %3577 = vmatpush3.bf16.msra.mxu1 %v3574_v16  ;;  %v3590_v16 = vpack.c.bf16 %v2963_v15, %v2962_v14  ;;  %v2993_v14 = vld [vmem:[%s4348_s12 + $0x28] sm:$0xff] }
 0xd87   :  { %v3327_v18 = vpop.f32.mrb[18].mxu0  ;;  %3579 = vmatprep.subr.bf16.mxu1 %v3578_v6 }
 0xd88   :  { %v1633_v19 = vadd.f32 %v3327_v18, %v2933_v17  ;;  %v1627_v20 = vpop.f32.mrb[19].mxu0  ;;  %v2965_v18 = vld [vmem:[%s4339_s3 + $0x78] sm:$0xff] }
 0xd89   :  { %v1628_v24 = vadd.f32 %v2933_v17, %v1627_v20  ;;  %v2964_v17 = vld [vmem:[%s4339_s3 + $0x70] sm:$0xff] }
 0xd8a   :  { %v3594_v22 = vpack.c.bf16 %v2965_v18, %v2964_v17  ;;  %v2995_v17 = vld [vmem:[%s4348_s12 + $0x38] sm:$0xff] }
 0xd8b   :  { %v3568_v25 = vpack.c.bf16 %v1633_v19, %v1628_v24  ;;  %v2967_v24 = vld [vmem:[%s4342_s6 + $0x3] ss:$0 sm:$0xff] }
 0xd8d   :  { %3570 = vmatprep.subr.msk.bf16.mxu0 %vm3877_vm2, %v3568_v25 }
 0xd8e   :  { %3573 = vmatpush3.bf16.xpose.msk.msra.mxu0 %vm3877_vm2, %v3568_v25 }
 0xd8f   :  { %3583 = vmatprep.subr.bf16.mxu0 %v3582_v28 }
 0xd95   :  { %3344 = vmatmul.mubr.msk.f32.vlgmr.msra.gmra.mrb[20].mxu0 %vm337_vm1, %v1545_v26 }
 0xd96   :  { %3585 = vmatpush3.bf16.msra.mxu0 %v3582_v28  ;;  %3368 = vmatprep.mubr.msk.f32.mxu0 %vm83_vm0, %v4122_v2 }
 0xd97   :  { %3587 = vmatprep.subr.bf16.mxu0 %v3586_v31 }
 0xd9a   :  { %3589 = vmatpush3.bf16.msra.mxu0 %v3586_v31 }
 0xd9b   :  { %3599 = vmatprep.subr.bf16.mxu0 %v3598_v33 }
 0xd9d   :  { %3369 = vmatmul.mubr.msk.f32.vlgmr.msra.gmra.mrb[22].mxu0 %vm83_vm0, %v4124_v3 }
 0xd9e   :  { %3601 = vmatpush3.bf16.msra.mxu0 %v3598_v33  ;;  %3390 = vmatprep.mubr.msk.f32.mxu0 %vm83_vm0, %v4122_v2 }
 0xd9f   :  { %3603 = vmatprep.subr.bf16.mxu0 %v3602_v5 }
 0xda2   :  { %3605 = vmatpush3.bf16.msra.mxu0 %v3602_v5 }
 0xda5   :  { %3391 = vmatmul.mubr.msk.f32.vlgmr.msra.gmra.mrb[24].mxu0 %vm83_vm0, %v4124_v3 }
 0xe68   :  { %v3345_v36 = vpop.f32.mrb[20].mxu0 }
 0xe69   :  { %v1812_v38 = vmul.f32 0.25, %v3345_v36  ;;  %v1802_v39 = vpop.f32.mrb[21].mxu0 }
 0xe6a   :  { %v1811_v40 = vmul.f32 0.25, %v1802_v39 }
 0xe6b   :  { %v1814_v41 = vadd.f32 %v1812_v38, %v3911_v37 }
 0xe6c   :  { %v1813_v42 = vadd.f32 %v1811_v40, %v3906_v34 }
 0xe6d   :  { %v1818_v43 = vsel %vm337_vm1, %v1814_v41, -inf }
 0xe6e   :  { %1819 = vmax.xlane.f32.xlu1 %v1818_v43  ;;  %v1815_v44 = vsel %vm337_vm1, %v1813_v42, -inf }
 0xe6f   :  { %1816 = vmax.xlane.f32.xlu0 %v1815_v44 }
 0xe70   :  { %v3370_v46 = vpop.f32.mrb[22].mxu0 }
 0xe71   :  { %v4192_v47 = vadd.f32 %v3370_v46, %v2959_v45  ;;  %v2083_v48 = vpop.f32.mrb[23].mxu0  ;;  %v2985_v46 = vld [vmem:[%s4344_s8 + $0x38] sm:$0xff] }
 0xe72   :  { %v2084_v23 = vadd.f32 %v2959_v45, %v2083_v48  ;;  %v2984_v45 = vld [vmem:[%s4344_s8 + $0x30] sm:$0xff] }
 0xe78   :  { %v3392_v50 = vpop.f32.mrb[24].mxu0 }
 0xe79   :  { %v2265_v51 = vadd.f32 %v3392_v50, %v2975_v49  ;;  %v2259_v52 = vpop.f32.mrb[25].mxu0 }
 0xe7a   :  { %v2260_v53 = vadd.f32 %v2975_v49, %v2259_v52 }
 0xe7c   :  { %v3612_v54 = vpack.c.bf16 %v2265_v51, %v2260_v53 }
 0xe7e   :  { %3613 = vmatprep.subr.bf16.mxu0 %v3612_v54 }
 0xe7f   :  { %3615 = vmatpush3.bf16.msra.mxu0 %v3612_v54 }
 0xefb   :  { %v1820_v55 = vpop.xlane.xlu1 %1819 }
 0xefc   :  { %v1822_v56 = vsub.f32 %v1814_v41, %v1820_v55  ;;  %v1817_v57 = vpop.xlane.xlu0 %1816 }
 0xefd   :  { %v1821_v58 = vsub.f32 %v1813_v42, %v1817_v57 }
 0xefe   :  { %v1825_v59 = vmul.f32 1.442695, %v1822_v56  ;;  %v2919_v56 = vld [vmem:[%s4345_s9 + $0x1] ss:$0 sm:$0xff] }
 0xeff   :  { %v1823_v60 = vmul.f32 1.442695, %v1821_v58 }
 0xf00   :  { %3679 = vpow2.f32 %v1825_v59 }
 0xf01   :  { %3681 = vpow2.f32 %v1823_v60 }
 0xf0a   :  { %v3680_v61 = vpop.eup %3679 }
 0xf0b   :  { %v3682_v62 = vpop.eup %3681  ;;  %v1830_v63 = vsel %vm337_vm1, %v3680_v61, 0.0 }
 0xf0c   :  { %1831 = vadd.xlane.f32.xlu1 %v1830_v63  ;;  %v1827_v0 = vsel %vm337_vm1, %v3682_v62, 0.0 }
 0xf0d   :  { %1828 = vadd.xlane.f32.xlu0 %v1827_v0 }
 0xf99   :  { %v1832_v7 = vpop.xlane.xlu1 %1831 }
 0xf9a   :  { %3683 = vrcp.f32 %v1832_v7  ;;  %v1829_v8 = vpop.xlane.xlu0 %1828 }
 0xf9b   :  { %3685 = vrcp.f32 %v1829_v8 }
 0xfa4   :  { %v3684_v9 = vpop.eup %3683 }
 0xfa5   :  { %v3686_v10 = vpop.eup %3685  ;;  %v1836_v12 = vmul.f32 %v3684_v9, %v3680_v61 }
 0xfa6   :  { %v1834_v11 = vmul.f32 %v3686_v10, %v3682_v62 }
 0xfa8   :  { %3350 = vmatprep.mubr.msk.f32.mxu1 %vm337_vm1, %v1834_v11 }
 0xfa9   :  { %3351 = vmatmul.mubr.msk.f32.vlgmr.msra.gmra.mrb[14].mxu1 %vm337_vm1, %v1836_v12 }
 0xfaa   :  { %3581 = vmatpush3.bf16.msra.mxu1 %v3578_v6 }
 0xfab   :  { %3591 = vmatprep.subr.bf16.mxu1 %v3590_v16 }
0x107c   :  { %v3352_v19 = vpop.f32.mrb[14].mxu1 }
0x107d   :  { %v1909_v20 = vpop.f32.mrb[15].mxu1 }
0x107e   :  { %3357 = vmatprep.mubr.msk.f32.mxu1 %vm337_vm1, %v1909_v20  ;;  %v3001_v20 = vld [vmem:[%s4350_s14 + $0x48] sm:$0xff] }
0x107f   :  { %3358 = vmatmul.mubr.msk.f32.vlgmr.msra.gmra.mrb[16].mxu1 %vm337_vm1, %v3352_v19  ;;  %v3000_v19 = vld [vmem:[%s4350_s14 + $0x40] sm:$0xff] }
0x1080   :  { %3593 = vmatpush3.bf16.msra.mxu1 %v3590_v16  ;;  %3379 = vmatprep.mubr.msk.f32.mxu1 %vm83_vm0, %v4122_v2  ;;  %v2994_v16 = vld [vmem:[%s4348_s12 + $0x30] sm:$0xff] }
0x1081   :  { %3595 = vmatprep.subr.bf16.mxu1 %v3594_v22  ;;  %v3624_v18 = vpack.c.bf16 %v2995_v17, %v2994_v16  ;;  %v3014_v16 = vld [vmem:[%s4352_s16 + $0x1] ss:$0 sm:$0xff] }
0x1084   :  { %3597 = vmatpush3.bf16.msra.mxu1 %v3594_v22  ;;  %v3002_v22 = vld [vmem:[%s4350_s14 + $0x50] sm:$0xff] }
0x1087   :  { %3380 = vmatmul.mubr.msk.f32.vlgmr.msra.gmra.mrb[18].mxu1 %vm83_vm0, %v4124_v3 }
0x1088   :  { %3397 = vmatprep.mubr.msk.f32.mxu1 %vm337_vm1, %v2084_v23  ;;  %v3628_v23 = vpack.c.bf16 %v3001_v20, %v3000_v19  ;;  %v3015_v20 = vld [vmem:[%s4353_s17 + $0x1] ss:$0 sm:$0xff] }
0x115a   :  { %v3381_v25 = vpop.f32.mrb[18].mxu1 }
0x115b   :  { %v2177_v28 = vadd.f32 %v3381_v25, %v2967_v24  ;;  %v2171_v29 = vpop.f32.mrb[19].mxu1 }
0x115c   :  { %v2172_v30 = vadd.f32 %v2967_v24, %v2171_v29  ;;  %v3003_v24 = vld [vmem:[%s4350_s14 + $0x58] sm:$0xff]  ;;  %v3005_v29 = vld [vmem:[%s4350_s14 + $0x68] sm:$0xff] }
0x115d   :  { %v3632_v25 = vpack.c.bf16 %v3003_v24, %v3002_v22 }
0x115e   :  { %v3606_v26 = vpack.c.bf16 %v2177_v28, %v2172_v30  ;;  %v3004_v28 = vld [vmem:[%s4350_s14 + $0x60] sm:$0xff] }
0x115f   :  { %v3636_v30 = vpack.c.bf16 %v3005_v29, %v3004_v28 }
0x1160   :  { %3608 = vmatprep.subr.msk.bf16.mxu1 %vm3877_vm2, %v3606_v26 }
0x1161   :  { %3611 = vmatpush3.bf16.xpose.msk.msra.mxu1 %vm3877_vm2, %v3606_v26 }
0x1168   :  { %3398 = vmatmul.mubr.msk.f32.vlgmr.msra.gmra.mrb[20].mxu1 %vm337_vm1, %v4192_v47  ;;  %v3616_v47 = vpack.c.bf16 %v2985_v46, %v2984_v45  ;;  %v2997_v45 = vld [vmem:[%s4349_s13 + $0x1] ss:$0 sm:$0xff] }
0x116a   :  { %3617 = vmatprep.subr.bf16.mxu1 %v3616_v47 }
0x116b   :  { %3619 = vmatpush3.bf16.msra.mxu1 %v3616_v47 }
0x116c   :  { %3629 = vmatprep.subr.bf16.mxu1 %v3628_v23 }
0x123b   :  { %v3399_v31 = vpop.f32.mrb[20].mxu1 }
0x123c   :  { %v2356_v27 = vmul.f32 0.25, %v3399_v31  ;;  %v2346_v32 = vpop.f32.mrb[21].mxu1 }
0x123d   :  { %v2355_v33 = vmul.f32 0.25, %v2346_v32 }
0x123e   :  { %v2358_v35 = vadd.f32 %v2356_v27, %v3911_v37 }
0x123f   :  { %v2357_v13 = vadd.f32 %v2355_v33, %v3906_v34 }
0x1240   :  { %v2362_v5 = vsel %vm337_vm1, %v2358_v35, -inf }
0x1241   :  { %2363 = vmax.xlane.f32.xlu1 %v2362_v5  ;;  %v2359_v36 = vsel %vm337_vm1, %v2357_v13, -inf  ;;  %v2990_v5 = vld [vmem:[%s4346_s10 + $0x1] ss:$0 sm:$0xff] }
0x1242   :  { %2360 = vmax.xlane.f32.xlu0 %v2359_v36 }
0x12ce   :  { %v2364_v38 = vpop.xlane.xlu1 %2363 }
0x12cf   :  { %v2366_v21 = vsub.f32 %v2358_v35, %v2364_v38  ;;  %v2361_v39 = vpop.xlane.xlu0 %2360 }
0x12d0   :  { %v2365_v40 = vsub.f32 %v2357_v13, %v2361_v39  ;;  %v2991_v39 = vld [vmem:[%s4347_s11 + $0x1] ss:$0 sm:$0xff] }
0x12d1   :  { %v2369_v41 = vmul.f32 1.442695, %v2366_v21 }
0x12d2   :  { %v2367_v42 = vmul.f32 1.442695, %v2365_v40 }
0x12d3   :  { %3687 = vpow2.f32 %v2369_v41 }
0x12d4   :  { %3689 = vpow2.f32 %v2367_v42 }
0x12dd   :  { %v3688_v43 = vpop.eup %3687 }
0x12de   :  { %v3690_v44 = vpop.eup %3689  ;;  %v2374_v37 = vsel %vm337_vm1, %v3688_v43, 0.0 }
0x12df   :  { %2375 = vadd.xlane.f32.xlu1 %v2374_v37  ;;  %v2371_v34 = vsel %vm337_vm1, %v3690_v44, 0.0  ;;  %v3007_v37 = vld [vmem:[%s4350_s14 + $0x78] sm:$0xff] }
0x12e0   :  { %2372 = vadd.xlane.f32.xlu0 %v2371_v34 }
0x136c   :  { %v2376_v48 = vpop.xlane.xlu1 %2375 }
0x136d   :  { %3691 = vrcp.f32 %v2376_v48  ;;  %v2373_v49 = vpop.xlane.xlu0 %2372 }
0x136e   :  { %3693 = vrcp.f32 %v2373_v49 }
0x1377   :  { %v3692_v50 = vpop.eup %3691 }
0x1378   :  { %v3694_v51 = vpop.eup %3693  ;;  %v2380_v53 = vmul.f32 %v3692_v50, %v3688_v43 }
0x1379   :  { %v2378_v52 = vmul.f32 %v3694_v51, %v3690_v44  ;;  %v3006_v44 = vld [vmem:[%s4350_s14 + $0x70] sm:$0xff] }
0x137a   :  { %v3640_v34 = vpack.c.bf16 %v3007_v37, %v3006_v44 }
0x137b   :  { %3404 = vmatprep.mubr.msk.f32.mxu0 %vm337_vm1, %v2378_v52  ;;  %v3009_v52 = vld [vmem:[%s4351_s15 + $0x1] ss:$0 sm:$0xff] }
0x137c   :  { %3405 = vmatmul.mubr.msk.f32.vlgmr.msra.gmra.mrb[26].mxu0 %vm337_vm1, %v2380_v53 }
0x144f   :  { %v3406_v54 = vpop.f32.mrb[26].mxu0 }
0x1450   :  { %v2453_v55 = vpop.f32.mrb[27].mxu0 }
0x1451   :  { %3411 = vmatprep.mubr.msk.f32.mxu1 %vm337_vm1, %v2453_v55 }
0x1452   :  { %3412 = vmatmul.mubr.msk.f32.vlgmr.msra.gmra.mrb[16].mxu1 %vm337_vm1, %v3406_v54 }
0x1453   :  { %3631 = vmatpush3.bf16.msra.mxu1 %v3628_v23 }
0x1454   :  { %3633 = vmatprep.subr.bf16.mxu1 %v3632_v25 }
0x1457   :  { %3635 = vmatpush3.bf16.msra.mxu1 %v3632_v25 }
0x1458   :  { %3637 = vmatprep.subr.bf16.mxu1 %v3636_v30 }
0x145b   :  { %3639 = vmatpush3.bf16.msra.mxu1 %v3636_v30 }
0x145c   :  { %3641 = vmatprep.subr.bf16.mxu1 %v3640_v34 }
0x145f   :  { %3643 = vmatpush3.bf16.msra.mxu1 %v3640_v34 }
0x1525   :  { %v3413_v57 = vpop.f32.mrb[16].mxu1 }
0x1526   :  { %v3648_v58 = vadd.f32 %v3413_v57, %v2919_v56  ;;  %v2537_v59 = vpop.f32.mrb[17].mxu1 }
0x1527   :  { %v3649_v60 = vadd.f32 %v2919_v56, %v2537_v59 }
0x1528   :  { %v2549_v61 = vadd.f32 %v3648_v58, %v4124_v3 }
0x1529   :  { %v2548_v62 = vadd.f32 %v3649_v60, %v4122_v2  ;;  %v2992_v2 = vld [vmem:[%s4348_s12 + $0x20] sm:$0xff] }
0x152a   :  { %v2557_v63 = vsel %vm83_vm0, %v2549_v61, 0.0  ;;  %v3620_v15 = vpack.c.bf16 %v2993_v14, %v2992_v2 }
0x152b   :  { %2558 = vadd.xlane.f32.xlu1 %v2557_v63  ;;  %v2554_v0 = vsel %vm83_vm0, %v2548_v62, 0.0 }
0x152c   :  { %2555 = vadd.xlane.f32.xlu0 %v2554_v0  ;;  %3621 = vmatprep.subr.bf16.mxu0 %v3620_v15 }
0x152d   :  { %3623 = vmatpush3.bf16.msra.mxu0 %v3620_v15 }
0x152e   :  { %3625 = vmatprep.subr.bf16.mxu0 %v3624_v18 }
0x1531   :  { %3627 = vmatpush3.bf16.msra.mxu0 %v3624_v18 }
0x15b8   :  { %v2559_v1 = vpop.xlane.xlu1 %2558 }
0x15b9   :  { %v2561_v4 = vmul.f32 0.03125, %v2559_v1  ;;  %v2556_v6 = vpop.xlane.xlu0 %2555 }
0x15ba   :  { %v2560_v7 = vmul.f32 0.03125, %v2556_v6 }
0x15bb   :  { %v2563_v8 = vsub.f32 %v2549_v61, %v2561_v4 }
0x15bc   :  { %v2562_v9 = vsub.f32 %v2548_v62, %v2560_v7 }
0x15bd   :  { %v2565_v10 = vmul.f32 %v2563_v8, %v2563_v8 }
0x15be   :  { %v2564_v11 = vmul.f32 %v2562_v9, %v2562_v9 }
0x15bf   :  { %v2569_v12 = vsel %vm83_vm0, %v2565_v10, 0.0 }
0x15c0   :  { %2570 = vadd.xlane.f32.xlu1 %v2569_v12  ;;  %v2566_v3 = vsel %vm83_vm0, %v2564_v11, 0.0 }
0x15c1   :  { %2567 = vadd.xlane.f32.xlu0 %v2566_v3 }
0x164d   :  { %v2571_v26 = vpop.xlane.xlu1 %2570 }
0x164e   :  { %v2573_v31 = vmul.f32 0.03125, %v2571_v26  ;;  %v2568_v27 = vpop.xlane.xlu0 %2567 }
0x164f   :  { %v2572_v32 = vmul.f32 0.03125, %v2568_v27 }
0x1650   :  { %v2575_v33 = vadd.f32 1e-05, %v2573_v31 }
0x1651   :  { %v2574_v35 = vadd.f32 1e-05, %v2572_v32 }
0x1652   :  { %3695 = vrsqrt.f32 %v2575_v33 }
0x1653   :  { %3697 = vrsqrt.f32 %v2574_v35 }
0x165c   :  { %v3696_v13 = vpop.eup %3695 }
0x165d   :  { %v3698_v36 = vpop.eup %3697  ;;  %v2579_v38 = vmul.f32 %v3696_v13, %v2563_v8 }
0x165e   :  { %v2578_v21 = vmul.f32 %v3698_v36, %v2562_v9 }
0x165f   :  { %v2587_v40 = vmul.f32 %v2990_v5, %v2579_v38 }
0x1660   :  { %v2586_v41 = vmul.f32 %v2990_v5, %v2578_v21 }
0x1661   :  { %v2595_v43 = vadd.f32 %v2991_v39, %v2587_v40 }
0x1662   :  { %v2594_v42 = vadd.f32 %v2991_v39, %v2586_v41 }
0x1664   :  { %3422 = vmatprep.mubr.msk.f32.mxu0 %vm83_vm0, %v2594_v42 }
0x1665   :  { %3423 = vmatmul.mubr.msk.f32.vlgmr.msra.gmra.mrb[28].mxu0 %vm83_vm0, %v2595_v43 }
0x1738   :  { %v3424_v46 = vpop.f32.mrb[28].mxu0 }
0x1739   :  { %v2687_v47 = vadd.f32 %v3424_v46, %v2997_v45  ;;  %v2681_v48 = vpop.f32.mrb[29].mxu0 }
0x173a   :  { %v2682_v49 = vadd.f32 %v2997_v45, %v2681_v48 }
0x173b   :  { %v2691_v51 = vmax.f32 %v2687_v47, 0.0 }
0x173c   :  { %v2690_v50 = vmax.f32 %v2682_v49, 0.0 }
0x173e   :  { %3441 = vmatprep.mubr.msk.f32.mxu1 %vm1317_vm3, %v2690_v50 }
0x173f   :  { %3442 = vmatmul.mubr.msk.f32.vlgmr.msra.gmra.mrb[22].mxu1 %vm1317_vm3, %v2691_v51 }
0x1812   :  { %v3443_v53 = vpop.f32.mrb[22].mxu1 }
0x1813   :  { %v2787_v54 = vadd.f32 %v3443_v53, %v3009_v52  ;;  %v2781_v55 = vpop.f32.mrb[23].mxu1 }
0x1814   :  { %v2782_v56 = vadd.f32 %v3009_v52, %v2781_v55 }
0x1815   :  { %v2791_v57 = vadd.f32 %v2787_v54, %v2595_v43 }
0x1816   :  { %v2790_v58 = vadd.f32 %v2782_v56, %v2594_v42 }
0x1817   :  { %v2799_v59 = vsel %vm83_vm0, %v2791_v57, 0.0 }
0x1818   :  { %2800 = vadd.xlane.f32.xlu1 %v2799_v59  ;;  %v2796_v60 = vsel %vm83_vm0, %v2790_v58, 0.0 }
0x1819   :  { %2797 = vadd.xlane.f32.xlu0 %v2796_v60 }
0x18a5   :  { %v2801_v61 = vpop.xlane.xlu1 %2800 }
0x18a6   :  { %v2803_v62 = vmul.f32 0.03125, %v2801_v61  ;;  %v2798_v63 = vpop.xlane.xlu0 %2797 }
0x18a7   :  { %v2802_v0 = vmul.f32 0.03125, %v2798_v63 }
0x18a8   :  { %v2805_v1 = vsub.f32 %v2791_v57, %v2803_v62 }
0x18a9   :  { %v2804_v4 = vsub.f32 %v2790_v58, %v2802_v0 }
0x18aa   :  { %v2807_v6 = vmul.f32 %v2805_v1, %v2805_v1 }
0x18ab   :  { %v2806_v7 = vmul.f32 %v2804_v4, %v2804_v4 }
0x18ac   :  { %v2811_v8 = vsel %vm83_vm0, %v2807_v6, 0.0 }
0x18ad   :  { %2812 = vadd.xlane.f32.xlu1 %v2811_v8  ;;  %v2808_v9 = vsel %vm83_vm0, %v2806_v7, 0.0 }
0x18ae   :  { %2809 = vadd.xlane.f32.xlu0 %v2808_v9 }
0x193a   :  { %v2813_v10 = vpop.xlane.xlu1 %2812 }
0x193b   :  { %v2815_v11 = vmul.f32 0.03125, %v2813_v10  ;;  %v2810_v12 = vpop.xlane.xlu0 %2809 }
0x193c   :  { %v2814_v3 = vmul.f32 0.03125, %v2810_v12 }
0x193d   :  { %v2817_v2 = vadd.f32 1e-05, %v2815_v11 }
0x193e   :  { %v2816_v14 = vadd.f32 1e-05, %v2814_v3 }
0x193f   :  { %3699 = vrsqrt.f32 %v2817_v2 }
0x1940   :  { %3701 = vrsqrt.f32 %v2816_v14 }
0x1949   :  { %v3700_v15 = vpop.eup %3699 }
0x194a   :  { %v3702_v17 = vpop.eup %3701  ;;  %v2821_v18 = vmul.f32 %v3700_v15, %v2805_v1 }
0x194b   :  { %v2820_v19 = vmul.f32 %v3702_v17, %v2804_v4 }
0x194c   :  { %v2829_v22 = vmul.f32 %v3014_v16, %v2821_v18 }
0x194d   :  { %v2828_v23 = vmul.f32 %v3014_v16, %v2820_v19 }
0x194e   :  { %v2837_v24 = vadd.f32 %v3015_v20, %v2829_v22 }
0x194f   :  { %v2836_v25 = vadd.f32 %v3015_v20, %v2828_v23 }
0x1950   :  { %2839 = vst.msk [vmem:[#allocation2 + $0x8] sm:$0xff] %vm83_vm0, %v2837_v24 }
0x1951   :  { %2838 = vst.msk [vmem:[#allocation2] sm:$0xff] %vm83_vm0, %v2836_v25 }
0x1952   :  { %3714 = shalt.err (!%p3711_p4)
}
0x1953   :  { %s3715_s30 = scalar_lea.hbm %s4354_s18, 256 }
0x1954   :  { %p3716_p5 = scmp.ne.s32.totalorder %s4354_s18, %s3715_s30  ;;  %p3719_p6 = scmp.lt.u32.totalorder %s3715_s30, %s4354_s18 }
0x1956   :  { %p3721_p7 = pnand %p3719_p6, %p3716_p5 }
0x1958   :  { %3724 = shalt.err (!%p3721_p7)
}
0x1959   :  { %s3728_s12 = smov 128   ;;  %s3729_s6 = smov 8  }
0x195a   :  { %2851 = dma.vmem_to_hbm [thread:$0]  %s2846_s28, 256, %s4354_s18, [#allocation3], %s3728_s12, %s3728_s12, %s3729_s6  }
0x195b   :  { %3725 = dma.done.wait [#allocation3], 256  }
0x195c   :  { %3726 = vsyncadd [#allocation3], 4294967040 }
0x195d   :  { %2855 = vsyncpa [#allocation3], 1 }

</bundles_post_ra>
